<compile_context>
chip_gen: v6e
topology: v6e:2x2x1
jax: 0.10.0
libtpu: 0.0.40
codegen_flags: <defaults>
</compile_context>

<pallas_src>
import math
import functools

import jax
import jax.numpy as jnp
from jax.experimental import pallas as pl
from jax.experimental.pallas import tpu as pltpu


# ------------------------------ fused kernel ------------------------------
def _transformer_kernel(x_ref, fcin_w_ref, fcin_b_ref,
                        wqkv_ref, bqkv_ref, wo_ref, bo_ref,
                        ln1w_ref, ln1b_ref, w1_ref, b1_ref, w2_ref, b2_ref,
                        ln2w_ref, ln2b_ref, encw_ref, encb_ref,
                        fcow_ref, fcob_ref, out_ref, *, nhead):
    B, S, _ = x_ref.shape
    D = fcin_w_ref.shape[1]
    L = wqkv_ref.shape[0]
    dh = D // nhead
    scale = 1.0 / math.sqrt(dh)

    def layer_norm(v, w, b):
        mu = jnp.mean(v, axis=-1, keepdims=True)
        c = v - mu
        var = jnp.mean(c * c, axis=-1, keepdims=True)
        return c * jax.lax.rsqrt(var + 1e-5) * w + b

    # fc_in over all B*S tokens in one lane-dense matmul.
    tokens = jnp.concatenate([x_ref[b] for b in range(B)], axis=0)          # (B*S, I)
    h = jnp.dot(tokens, fcin_w_ref[...],
                preferred_element_type=jnp.float32) + fcin_b_ref[...]       # (B*S, D)

    for l in range(L):                                                      # static unroll
        # -------- multi-head self-attention (post-LN encoder layer) --------
        qkv = jnp.dot(h, wqkv_ref[l],
                      preferred_element_type=jnp.float32) + bqkv_ref[l]     # (B*S, 3D)
        attn_rows = []
        for b in range(B):                                                  # attention per sequence
            qkv_b = qkv[b * S:(b + 1) * S, :]                               # (S, 3D)
            heads = []
            for hd in range(nhead):
                qh = qkv_b[:, hd * dh:(hd + 1) * dh]                        # (S, dh)
                kh = qkv_b[:, D + hd * dh:D + (hd + 1) * dh]
                vh = qkv_b[:, 2 * D + hd * dh:2 * D + (hd + 1) * dh]
                s = jnp.dot(qh, kh.T, preferred_element_type=jnp.float32) * scale   # (S, S)
                s = s - jnp.max(s, axis=-1, keepdims=True)
                p = jnp.exp(s)
                p = p / jnp.sum(p, axis=-1, keepdims=True)
                heads.append(jnp.dot(p, vh, preferred_element_type=jnp.float32))    # (S, dh)
            attn_rows.append(jnp.concatenate(heads, axis=-1))               # (S, D)
        attn = jnp.concatenate(attn_rows, axis=0)                           # (B*S, D)
        attn = jnp.dot(attn, wo_ref[l],
                       preferred_element_type=jnp.float32) + bo_ref[l]
        h = layer_norm(h + attn, ln1w_ref[l], ln1b_ref[l])

        # ------------------------- feed-forward (ReLU) -------------------------
        ff = jnp.dot(h, w1_ref[l], preferred_element_type=jnp.float32) + b1_ref[l]
        ff = jnp.maximum(ff, 0.0)
        ff = jnp.dot(ff, w2_ref[l], preferred_element_type=jnp.float32) + b2_ref[l]
        h = layer_norm(h + ff, ln2w_ref[l], ln2b_ref[l])

    # Final encoder LayerNorm (nn.Transformer passes encoder_norm to TransformerEncoder).
    h = layer_norm(h, encw_ref[...], encb_ref[...])

    # output[:, -1, :] -> rows b*S + (S-1); then fc_out: (B, D) @ (D, 1) + b.
    last = jnp.concatenate([h[b * S + S - 1:b * S + S, :] for b in range(B)], axis=0)  # (B, D)
    out = jnp.dot(last, fcow_ref[...],
                  preferred_element_type=jnp.float32) + fcob_ref[...]       # (B, 1)
    out_ref[...] = out.astype(out_ref.dtype)


# ------------------------------ wrapper ------------------------------
@functools.partial(jax.jit, static_argnames=("nhead",))
def transformer_forward(x, params, *, nhead):
    """x: (B, S, input_dim) float32 -> (B, 1) float32 (matches Transformer.forward)."""
    B = x.shape[0]
    kernel = functools.partial(_transformer_kernel, nhead=nhead)
    args = (x.astype(jnp.float32),
            params["fc_in_w"], params["fc_in_b"],
            params["wqkv"], params["bqkv"], params["wo"], params["bo"],
            params["ln1w"], params["ln1b"],
            params["w1"], params["b1"], params["w2"], params["b2"],
            params["ln2w"], params["ln2b"],
            params["enc_norm_w"], params["enc_norm_b"],
            params["fc_out_w"], params["fc_out_b"])
    vmem = pl.BlockSpec(memory_space=pltpu.MemorySpace.VMEM)
    return pl.pallas_call(
        kernel,
        out_shape=jax.ShapeDtypeStruct((B, 1), jnp.float32),
        in_specs=[vmem] * len(args),
        out_specs=vmem,
    )(*args)


# ------------------------------ parameter init ------------------------------
def init_params(key, input_dim, d_model, nhead, num_layers, dim_feedforward):
    """Weights stored pre-transposed (in_features, out_features) and stacked per layer."""
    def uniform(k, shape, bound):
        return jax.random.uniform(k, shape, jnp.float32, -bound, bound)

    keys = jax.random.split(key, 4 + num_layers)
    p = {}
    b_in = 1.0 / math.sqrt(input_dim)
    p["fc_in_w"] = uniform(keys[0], (input_dim, d_model), b_in)      # fc_in.weight^T
    p["fc_in_b"] = uniform(keys[1], (1, d_model), b_in)
    b_d = 1.0 / math.sqrt(d_model)
    p["fc_out_w"] = uniform(keys[2], (d_model, 1), b_d)              # fc_out.weight^T
    p["fc_out_b"] = uniform(keys[3], (1, 1), b_d)

    wqkv, bqkv, wo, bo = [], [], [], []
    w1, b1, w2, b2 = [], [], [], []
    ln1w, ln1b, ln2w, ln2b = [], [], [], []
    b_ff = 1.0 / math.sqrt(dim_feedforward)
    for l in range(num_layers):
        lk = jax.random.split(keys[4 + l], 8)
        wqkv.append(uniform(lk[0], (d_model, 3 * d_model), b_d))     # in_proj_weight^T (Q|K|V cols)
        bqkv.append(uniform(lk[1], (1, 3 * d_model), b_d))
        wo.append(uniform(lk[2], (d_model, d_model), b_d))           # out_proj.weight^T
        bo.append(uniform(lk[3], (1, d_model), b_d))
        w1.append(uniform(lk[4], (d_model, dim_feedforward), b_d))   # linear1.weight^T
        b1.append(uniform(lk[5], (1, dim_feedforward), b_d))
        w2.append(uniform(lk[6], (dim_feedforward, d_model), b_ff))  # linear2.weight^T
        b2.append(uniform(lk[7], (1, d_model), b_ff))
        ln1w.append(jnp.ones((1, d_model), jnp.float32))
        ln1b.append(jnp.zeros((1, d_model), jnp.float32))
        ln2w.append(jnp.ones((1, d_model), jnp.float32))
        ln2b.append(jnp.zeros((1, d_model), jnp.float32))

    stack = lambda xs: jnp.stack(xs, axis=0)
    p["wqkv"], p["bqkv"] = stack(wqkv), stack(bqkv)
    p["wo"], p["bo"] = stack(wo), stack(bo)
    p["w1"], p["b1"] = stack(w1), stack(b1)
    p["w2"], p["b2"] = stack(w2), stack(b2)
    p["ln1w"], p["ln1b"] = stack(ln1w), stack(ln1b)
    p["ln2w"], p["ln2b"] = stack(ln2w), stack(ln2b)
    p["enc_norm_w"] = jnp.ones((1, d_model), jnp.float32)
    p["enc_norm_b"] = jnp.zeros((1, d_model), jnp.float32)
    return p


if __name__ == "__main__":
    input_dim, d_model, nhead = 16, 32, 4
    num_encoder_layers, num_decoder_layers = 2, 2   # decoder never used by forward()
    dim_feedforward = 64
    batch, seq = 2, 8

    key = jax.random.PRNGKey(0)
    key, xkey, pkey = jax.random.split(key, 3)
    x = jax.random.normal(xkey, (batch, seq, input_dim), jnp.float32)
    params = init_params(pkey, input_dim, d_model, nhead, num_encoder_layers, dim_feedforward)

    out = transformer_forward(x, params, nhead=nhead)
    jax.block_until_ready(out)
    assert out.shape == (batch, 1)
    print("KERNEL_OK")
</pallas_src>

<mosaic_0001>
module attributes {stable_mosaic.version = 11 : i64} {
  func.func @_transformer_kernel(%arg0: memref<2x8x16xf32, #tpu.memory_space<vmem>>, %arg1: memref<16x32xf32, #tpu.memory_space<vmem>>, %arg2: memref<1x32xf32, #tpu.memory_space<vmem>>, %arg3: memref<2x32x96xf32, #tpu.memory_space<vmem>>, %arg4: memref<2x1x96xf32, #tpu.memory_space<vmem>>, %arg5: memref<2x32x32xf32, #tpu.memory_space<vmem>>, %arg6: memref<2x1x32xf32, #tpu.memory_space<vmem>>, %arg7: memref<2x1x32xf32, #tpu.memory_space<vmem>>, %arg8: memref<2x1x32xf32, #tpu.memory_space<vmem>>, %arg9: memref<2x32x64xf32, #tpu.memory_space<vmem>>, %arg10: memref<2x1x64xf32, #tpu.memory_space<vmem>>, %arg11: memref<2x64x32xf32, #tpu.memory_space<vmem>>, %arg12: memref<2x1x32xf32, #tpu.memory_space<vmem>>, %arg13: memref<2x1x32xf32, #tpu.memory_space<vmem>>, %arg14: memref<2x1x32xf32, #tpu.memory_space<vmem>>, %arg15: memref<1x32xf32, #tpu.memory_space<vmem>>, %arg16: memref<1x32xf32, #tpu.memory_space<vmem>>, %arg17: memref<32x1xf32, #tpu.memory_space<vmem>>, %arg18: memref<1x1xf32, #tpu.memory_space<vmem>>, %arg19: memref<2x1xf32, #tpu.memory_space<vmem>>) attributes {dimension_semantics = [], scalar_prefetch = 0 : i64, scratch_operands = 0 : i64, tpu.core_type = #tpu.core_type<tc>} {
    %c0 = arith.constant 0 : index
    %c0_0 = arith.constant 0 : index
    %c0_1 = arith.constant 0 : index
    %0 = vector.load %arg0[%c0, %c0_0, %c0_1] : memref<2x8x16xf32, #tpu.memory_space<vmem>>, vector<1x8x16xf32>
    %1 = vector.shape_cast %0 : vector<1x8x16xf32> to vector<8x16xf32>
    %c1 = arith.constant 1 : index
    %c0_2 = arith.constant 0 : index
    %c0_3 = arith.constant 0 : index
    %2 = vector.load %arg0[%c1, %c0_2, %c0_3] : memref<2x8x16xf32, #tpu.memory_space<vmem>>, vector<1x8x16xf32>
    %3 = vector.shape_cast %2 : vector<1x8x16xf32> to vector<8x16xf32>
    %4 = tpu.concatenate %1, %3 in 0 : vector<8x16xf32>, vector<8x16xf32> -> vector<16x16xf32>
    %c0_4 = arith.constant 0 : index
    %c0_5 = arith.constant 0 : index
    %5 = vector.load %arg1[%c0_4, %c0_5] : memref<16x32xf32, #tpu.memory_space<vmem>>, vector<16x32xf32>
    %cst = arith.constant dense<0.000000e+00> : vector<16x32xf32>
    %6 = tpu.matmul %4, %5, %cst {dimension_numbers = #tpu.dot_dimension_numbers<[1], [0], [0], [1], [0, 0, 1, 1], [], []>} : vector<16x16xf32>, vector<16x32xf32>, vector<16x32xf32> -> vector<16x32xf32>
    %c0_6 = arith.constant 0 : index
    %c0_7 = arith.constant 0 : index
    %7 = vector.load %arg2[%c0_6, %c0_7] : memref<1x32xf32, #tpu.memory_space<vmem>>, vector<1x32xf32>
    %8 = vector.broadcast %7 : vector<1x32xf32> to vector<16x32xf32>
    %9 = arith.addf %6, %8 : vector<16x32xf32>
    %c0_8 = arith.constant 0 : index
    %c0_9 = arith.constant 0 : index
    %c0_10 = arith.constant 0 : index
    %10 = vector.load %arg3[%c0_8, %c0_9, %c0_10] : memref<2x32x96xf32, #tpu.memory_space<vmem>>, vector<1x32x96xf32>
    %11 = vector.shape_cast %10 : vector<1x32x96xf32> to vector<32x96xf32>
    %cst_11 = arith.constant dense<0.000000e+00> : vector<16x96xf32>
    %12 = tpu.matmul %9, %11, %cst_11 {dimension_numbers = #tpu.dot_dimension_numbers<[1], [0], [0], [1], [0, 0, 1, 1], [], []>} : vector<16x32xf32>, vector<32x96xf32>, vector<16x96xf32> -> vector<16x96xf32>
    %c0_12 = arith.constant 0 : index
    %c0_13 = arith.constant 0 : index
    %c0_14 = arith.constant 0 : index
    %13 = vector.load %arg4[%c0_12, %c0_13, %c0_14] : memref<2x1x96xf32, #tpu.memory_space<vmem>>, vector<1x1x96xf32>
    %14 = vector.shape_cast %13 : vector<1x1x96xf32> to vector<1x96xf32>
    %15 = vector.broadcast %14 : vector<1x96xf32> to vector<16x96xf32>
    %16 = arith.addf %12, %15 : vector<16x96xf32>
    %17 = vector.extract_strided_slice %16 {offsets = [0, 0], sizes = [8, 96], strides = [1, 1]} : vector<16x96xf32> to vector<8x96xf32>
    %18 = vector.extract_strided_slice %17 {offsets = [0, 0], sizes = [8, 8], strides = [1, 1]} : vector<8x96xf32> to vector<8x8xf32>
    %19 = vector.extract_strided_slice %17 {offsets = [0, 32], sizes = [8, 8], strides = [1, 1]} : vector<8x96xf32> to vector<8x8xf32>
    %20 = vector.extract_strided_slice %17 {offsets = [0, 64], sizes = [8, 8], strides = [1, 1]} : vector<8x96xf32> to vector<8x8xf32>
    %21 = tpu.transpose %19, [1, 0] : vector<8x8xf32> -> vector<8x8xf32>
    %cst_15 = arith.constant dense<0.000000e+00> : vector<8x8xf32>
    %22 = tpu.matmul %18, %21, %cst_15 {dimension_numbers = #tpu.dot_dimension_numbers<[1], [0], [0], [1], [0, 0, 1, 1], [], []>} : vector<8x8xf32>, vector<8x8xf32>, vector<8x8xf32> -> vector<8x8xf32>
    %cst_16 = arith.constant 0.353553385 : f32
    %23 = vector.broadcast %cst_16 : f32 to vector<8x8xf32>
    %24 = arith.mulf %22, %23 : vector<8x8xf32>
    %cst_17 = arith.constant dense<0xFF800000> : vector<8xf32>
    %25 = vector.multi_reduction <maximumf>, %24, %cst_17 [1] : vector<8x8xf32> to vector<8xf32>
    %26 = vector.shape_cast %25 : vector<8xf32> to vector<8x1xf32>
    %27 = vector.broadcast %26 : vector<8x1xf32> to vector<8x8xf32>
    %28 = arith.subf %24, %27 : vector<8x8xf32>
    %29 = math.exp %28 : vector<8x8xf32>
    %cst_18 = arith.constant dense<0.000000e+00> : vector<8xf32>
    %30 = vector.multi_reduction <add>, %29, %cst_18 [1] : vector<8x8xf32> to vector<8xf32>
    %31 = vector.shape_cast %30 : vector<8xf32> to vector<8x1xf32>
    %32 = vector.broadcast %31 : vector<8x1xf32> to vector<8x8xf32>
    %33 = arith.divf %29, %32 : vector<8x8xf32>
    %cst_19 = arith.constant dense<0.000000e+00> : vector<8x8xf32>
    %34 = tpu.matmul %33, %20, %cst_19 {dimension_numbers = #tpu.dot_dimension_numbers<[1], [0], [0], [1], [0, 0, 1, 1], [], []>} : vector<8x8xf32>, vector<8x8xf32>, vector<8x8xf32> -> vector<8x8xf32>
    %35 = vector.extract_strided_slice %17 {offsets = [0, 8], sizes = [8, 8], strides = [1, 1]} : vector<8x96xf32> to vector<8x8xf32>
    %36 = vector.extract_strided_slice %17 {offsets = [0, 40], sizes = [8, 8], strides = [1, 1]} : vector<8x96xf32> to vector<8x8xf32>
    %37 = vector.extract_strided_slice %17 {offsets = [0, 72], sizes = [8, 8], strides = [1, 1]} : vector<8x96xf32> to vector<8x8xf32>
    %38 = tpu.transpose %36, [1, 0] : vector<8x8xf32> -> vector<8x8xf32>
    %cst_20 = arith.constant dense<0.000000e+00> : vector<8x8xf32>
    %39 = tpu.matmul %35, %38, %cst_20 {dimension_numbers = #tpu.dot_dimension_numbers<[1], [0], [0], [1], [0, 0, 1, 1], [], []>} : vector<8x8xf32>, vector<8x8xf32>, vector<8x8xf32> -> vector<8x8xf32>
    %cst_21 = arith.constant 0.353553385 : f32
    %40 = vector.broadcast %cst_21 : f32 to vector<8x8xf32>
    %41 = arith.mulf %39, %40 : vector<8x8xf32>
    %cst_22 = arith.constant dense<0xFF800000> : vector<8xf32>
    %42 = vector.multi_reduction <maximumf>, %41, %cst_22 [1] : vector<8x8xf32> to vector<8xf32>
    %43 = vector.shape_cast %42 : vector<8xf32> to vector<8x1xf32>
    %44 = vector.broadcast %43 : vector<8x1xf32> to vector<8x8xf32>
    %45 = arith.subf %41, %44 : vector<8x8xf32>
    %46 = math.exp %45 : vector<8x8xf32>
    %cst_23 = arith.constant dense<0.000000e+00> : vector<8xf32>
    %47 = vector.multi_reduction <add>, %46, %cst_23 [1] : vector<8x8xf32> to vector<8xf32>
    %48 = vector.shape_cast %47 : vector<8xf32> to vector<8x1xf32>
    %49 = vector.broadcast %48 : vector<8x1xf32> to vector<8x8xf32>
    %50 = arith.divf %46, %49 : vector<8x8xf32>
    %cst_24 = arith.constant dense<0.000000e+00> : vector<8x8xf32>
    %51 = tpu.matmul %50, %37, %cst_24 {dimension_numbers = #tpu.dot_dimension_numbers<[1], [0], [0], [1], [0, 0, 1, 1], [], []>} : vector<8x8xf32>, vector<8x8xf32>, vector<8x8xf32> -> vector<8x8xf32>
    %52 = vector.extract_strided_slice %17 {offsets = [0, 16], sizes = [8, 8], strides = [1, 1]} : vector<8x96xf32> to vector<8x8xf32>
    %53 = vector.extract_strided_slice %17 {offsets = [0, 48], sizes = [8, 8], strides = [1, 1]} : vector<8x96xf32> to vector<8x8xf32>
    %54 = vector.extract_strided_slice %17 {offsets = [0, 80], sizes = [8, 8], strides = [1, 1]} : vector<8x96xf32> to vector<8x8xf32>
    %55 = tpu.transpose %53, [1, 0] : vector<8x8xf32> -> vector<8x8xf32>
    %cst_25 = arith.constant dense<0.000000e+00> : vector<8x8xf32>
    %56 = tpu.matmul %52, %55, %cst_25 {dimension_numbers = #tpu.dot_dimension_numbers<[1], [0], [0], [1], [0, 0, 1, 1], [], []>} : vector<8x8xf32>, vector<8x8xf32>, vector<8x8xf32> -> vector<8x8xf32>
    %cst_26 = arith.constant 0.353553385 : f32
    %57 = vector.broadcast %cst_26 : f32 to vector<8x8xf32>
    %58 = arith.mulf %56, %57 : vector<8x8xf32>
    %cst_27 = arith.constant dense<0xFF800000> : vector<8xf32>
    %59 = vector.multi_reduction <maximumf>, %58, %cst_27 [1] : vector<8x8xf32> to vector<8xf32>
    %60 = vector.shape_cast %59 : vector<8xf32> to vector<8x1xf32>
    %61 = vector.broadcast %60 : vector<8x1xf32> to vector<8x8xf32>
    %62 = arith.subf %58, %61 : vector<8x8xf32>
    %63 = math.exp %62 : vector<8x8xf32>
    %cst_28 = arith.constant dense<0.000000e+00> : vector<8xf32>
    %64 = vector.multi_reduction <add>, %63, %cst_28 [1] : vector<8x8xf32> to vector<8xf32>
    %65 = vector.shape_cast %64 : vector<8xf32> to vector<8x1xf32>
    %66 = vector.broadcast %65 : vector<8x1xf32> to vector<8x8xf32>
    %67 = arith.divf %63, %66 : vector<8x8xf32>
    %cst_29 = arith.constant dense<0.000000e+00> : vector<8x8xf32>
    %68 = tpu.matmul %67, %54, %cst_29 {dimension_numbers = #tpu.dot_dimension_numbers<[1], [0], [0], [1], [0, 0, 1, 1], [], []>} : vector<8x8xf32>, vector<8x8xf32>, vector<8x8xf32> -> vector<8x8xf32>
    %69 = vector.extract_strided_slice %17 {offsets = [0, 24], sizes = [8, 8], strides = [1, 1]} : vector<8x96xf32> to vector<8x8xf32>
    %70 = vector.extract_strided_slice %17 {offsets = [0, 56], sizes = [8, 8], strides = [1, 1]} : vector<8x96xf32> to vector<8x8xf32>
    %71 = vector.extract_strided_slice %17 {offsets = [0, 88], sizes = [8, 8], strides = [1, 1]} : vector<8x96xf32> to vector<8x8xf32>
    %72 = tpu.transpose %70, [1, 0] : vector<8x8xf32> -> vector<8x8xf32>
    %cst_30 = arith.constant dense<0.000000e+00> : vector<8x8xf32>
    %73 = tpu.matmul %69, %72, %cst_30 {dimension_numbers = #tpu.dot_dimension_numbers<[1], [0], [0], [1], [0, 0, 1, 1], [], []>} : vector<8x8xf32>, vector<8x8xf32>, vector<8x8xf32> -> vector<8x8xf32>
    %cst_31 = arith.constant 0.353553385 : f32
    %74 = vector.broadcast %cst_31 : f32 to vector<8x8xf32>
    %75 = arith.mulf %73, %74 : vector<8x8xf32>
    %cst_32 = arith.constant dense<0xFF800000> : vector<8xf32>
    %76 = vector.multi_reduction <maximumf>, %75, %cst_32 [1] : vector<8x8xf32> to vector<8xf32>
    %77 = vector.shape_cast %76 : vector<8xf32> to vector<8x1xf32>
    %78 = vector.broadcast %77 : vector<8x1xf32> to vector<8x8xf32>
    %79 = arith.subf %75, %78 : vector<8x8xf32>
    %80 = math.exp %79 : vector<8x8xf32>
    %cst_33 = arith.constant dense<0.000000e+00> : vector<8xf32>
    %81 = vector.multi_reduction <add>, %80, %cst_33 [1] : vector<8x8xf32> to vector<8xf32>
    %82 = vector.shape_cast %81 : vector<8xf32> to vector<8x1xf32>
    %83 = vector.broadcast %82 : vector<8x1xf32> to vector<8x8xf32>
    %84 = arith.divf %80, %83 : vector<8x8xf32>
    %cst_34 = arith.constant dense<0.000000e+00> : vector<8x8xf32>
    %85 = tpu.matmul %84, %71, %cst_34 {dimension_numbers = #tpu.dot_dimension_numbers<[1], [0], [0], [1], [0, 0, 1, 1], [], []>} : vector<8x8xf32>, vector<8x8xf32>, vector<8x8xf32> -> vector<8x8xf32>
    %86 = tpu.concatenate %34, %51, %68, %85 in 1 : vector<8x8xf32>, vector<8x8xf32>, vector<8x8xf32>, vector<8x8xf32> -> vector<8x32xf32>
    %87 = vector.extract_strided_slice %16 {offsets = [8, 0], sizes = [8, 96], strides = [1, 1]} : vector<16x96xf32> to vector<8x96xf32>
    %88 = vector.extract_strided_slice %87 {offsets = [0, 0], sizes = [8, 8], strides = [1, 1]} : vector<8x96xf32> to vector<8x8xf32>
    %89 = vector.extract_strided_slice %87 {offsets = [0, 32], sizes = [8, 8], strides = [1, 1]} : vector<8x96xf32> to vector<8x8xf32>
    %90 = vector.extract_strided_slice %87 {offsets = [0, 64], sizes = [8, 8], strides = [1, 1]} : vector<8x96xf32> to vector<8x8xf32>
    %91 = tpu.transpose %89, [1, 0] : vector<8x8xf32> -> vector<8x8xf32>
    %cst_35 = arith.constant dense<0.000000e+00> : vector<8x8xf32>
    %92 = tpu.matmul %88, %91, %cst_35 {dimension_numbers = #tpu.dot_dimension_numbers<[1], [0], [0], [1], [0, 0, 1, 1], [], []>} : vector<8x8xf32>, vector<8x8xf32>, vector<8x8xf32> -> vector<8x8xf32>
    %cst_36 = arith.constant 0.353553385 : f32
    %93 = vector.broadcast %cst_36 : f32 to vector<8x8xf32>
    %94 = arith.mulf %92, %93 : vector<8x8xf32>
    %cst_37 = arith.constant dense<0xFF800000> : vector<8xf32>
    %95 = vector.multi_reduction <maximumf>, %94, %cst_37 [1] : vector<8x8xf32> to vector<8xf32>
    %96 = vector.shape_cast %95 : vector<8xf32> to vector<8x1xf32>
    %97 = vector.broadcast %96 : vector<8x1xf32> to vector<8x8xf32>
    %98 = arith.subf %94, %97 : vector<8x8xf32>
    %99 = math.exp %98 : vector<8x8xf32>
    %cst_38 = arith.constant dense<0.000000e+00> : vector<8xf32>
    %100 = vector.multi_reduction <add>, %99, %cst_38 [1] : vector<8x8xf32> to vector<8xf32>
    %101 = vector.shape_cast %100 : vector<8xf32> to vector<8x1xf32>
    %102 = vector.broadcast %101 : vector<8x1xf32> to vector<8x8xf32>
    %103 = arith.divf %99, %102 : vector<8x8xf32>
    %cst_39 = arith.constant dense<0.000000e+00> : vector<8x8xf32>
    %104 = tpu.matmul %103, %90, %cst_39 {dimension_numbers = #tpu.dot_dimension_numbers<[1], [0], [0], [1], [0, 0, 1, 1], [], []>} : vector<8x8xf32>, vector<8x8xf32>, vector<8x8xf32> -> vector<8x8xf32>
    %105 = vector.extract_strided_slice %87 {offsets = [0, 8], sizes = [8, 8], strides = [1, 1]} : vector<8x96xf32> to vector<8x8xf32>
    %106 = vector.extract_strided_slice %87 {offsets = [0, 40], sizes = [8, 8], strides = [1, 1]} : vector<8x96xf32> to vector<8x8xf32>
    %107 = vector.extract_strided_slice %87 {offsets = [0, 72], sizes = [8, 8], strides = [1, 1]} : vector<8x96xf32> to vector<8x8xf32>
    %108 = tpu.transpose %106, [1, 0] : vector<8x8xf32> -> vector<8x8xf32>
    %cst_40 = arith.constant dense<0.000000e+00> : vector<8x8xf32>
    %109 = tpu.matmul %105, %108, %cst_40 {dimension_numbers = #tpu.dot_dimension_numbers<[1], [0], [0], [1], [0, 0, 1, 1], [], []>} : vector<8x8xf32>, vector<8x8xf32>, vector<8x8xf32> -> vector<8x8xf32>
    %cst_41 = arith.constant 0.353553385 : f32
    %110 = vector.broadcast %cst_41 : f32 to vector<8x8xf32>
    %111 = arith.mulf %109, %110 : vector<8x8xf32>
    %cst_42 = arith.constant dense<0xFF800000> : vector<8xf32>
    %112 = vector.multi_reduction <maximumf>, %111, %cst_42 [1] : vector<8x8xf32> to vector<8xf32>
    %113 = vector.shape_cast %112 : vector<8xf32> to vector<8x1xf32>
    %114 = vector.broadcast %113 : vector<8x1xf32> to vector<8x8xf32>
    %115 = arith.subf %111, %114 : vector<8x8xf32>
    %116 = math.exp %115 : vector<8x8xf32>
    %cst_43 = arith.constant dense<0.000000e+00> : vector<8xf32>
    %117 = vector.multi_reduction <add>, %116, %cst_43 [1] : vector<8x8xf32> to vector<8xf32>
    %118 = vector.shape_cast %117 : vector<8xf32> to vector<8x1xf32>
    %119 = vector.broadcast %118 : vector<8x1xf32> to vector<8x8xf32>
    %120 = arith.divf %116, %119 : vector<8x8xf32>
    %cst_44 = arith.constant dense<0.000000e+00> : vector<8x8xf32>
    %121 = tpu.matmul %120, %107, %cst_44 {dimension_numbers = #tpu.dot_dimension_numbers<[1], [0], [0], [1], [0, 0, 1, 1], [], []>} : vector<8x8xf32>, vector<8x8xf32>, vector<8x8xf32> -> vector<8x8xf32>
    %122 = vector.extract_strided_slice %87 {offsets = [0, 16], sizes = [8, 8], strides = [1, 1]} : vector<8x96xf32> to vector<8x8xf32>
    %123 = vector.extract_strided_slice %87 {offsets = [0, 48], sizes = [8, 8], strides = [1, 1]} : vector<8x96xf32> to vector<8x8xf32>
    %124 = vector.extract_strided_slice %87 {offsets = [0, 80], sizes = [8, 8], strides = [1, 1]} : vector<8x96xf32> to vector<8x8xf32>
    %125 = tpu.transpose %123, [1, 0] : vector<8x8xf32> -> vector<8x8xf32>
    %cst_45 = arith.constant dense<0.000000e+00> : vector<8x8xf32>
    %126 = tpu.matmul %122, %125, %cst_45 {dimension_numbers = #tpu.dot_dimension_numbers<[1], [0], [0], [1], [0, 0, 1, 1], [], []>} : vector<8x8xf32>, vector<8x8xf32>, vector<8x8xf32> -> vector<8x8xf32>
    %cst_46 = arith.constant 0.353553385 : f32
    %127 = vector.broadcast %cst_46 : f32 to vector<8x8xf32>
    %128 = arith.mulf %126, %127 : vector<8x8xf32>
    %cst_47 = arith.constant dense<0xFF800000> : vector<8xf32>
    %129 = vector.multi_reduction <maximumf>, %128, %cst_47 [1] : vector<8x8xf32> to vector<8xf32>
    %130 = vector.shape_cast %129 : vector<8xf32> to vector<8x1xf32>
    %131 = vector.broadcast %130 : vector<8x1xf32> to vector<8x8xf32>
    %132 = arith.subf %128, %131 : vector<8x8xf32>
    %133 = math.exp %132 : vector<8x8xf32>
    %cst_48 = arith.constant dense<0.000000e+00> : vector<8xf32>
    %134 = vector.multi_reduction <add>, %133, %cst_48 [1] : vector<8x8xf32> to vector<8xf32>
    %135 = vector.shape_cast %134 : vector<8xf32> to vector<8x1xf32>
    %136 = vector.broadcast %135 : vector<8x1xf32> to vector<8x8xf32>
    %137 = arith.divf %133, %136 : vector<8x8xf32>
    %cst_49 = arith.constant dense<0.000000e+00> : vector<8x8xf32>
    %138 = tpu.matmul %137, %124, %cst_49 {dimension_numbers = #tpu.dot_dimension_numbers<[1], [0], [0], [1], [0, 0, 1, 1], [], []>} : vector<8x8xf32>, vector<8x8xf32>, vector<8x8xf32> -> vector<8x8xf32>
    %139 = vector.extract_strided_slice %87 {offsets = [0, 24], sizes = [8, 8], strides = [1, 1]} : vector<8x96xf32> to vector<8x8xf32>
    %140 = vector.extract_strided_slice %87 {offsets = [0, 56], sizes = [8, 8], strides = [1, 1]} : vector<8x96xf32> to vector<8x8xf32>
    %141 = vector.extract_strided_slice %87 {offsets = [0, 88], sizes = [8, 8], strides = [1, 1]} : vector<8x96xf32> to vector<8x8xf32>
    %142 = tpu.transpose %140, [1, 0] : vector<8x8xf32> -> vector<8x8xf32>
    %cst_50 = arith.constant dense<0.000000e+00> : vector<8x8xf32>
    %143 = tpu.matmul %139, %142, %cst_50 {dimension_numbers = #tpu.dot_dimension_numbers<[1], [0], [0], [1], [0, 0, 1, 1], [], []>} : vector<8x8xf32>, vector<8x8xf32>, vector<8x8xf32> -> vector<8x8xf32>
    %cst_51 = arith.constant 0.353553385 : f32
    %144 = vector.broadcast %cst_51 : f32 to vector<8x8xf32>
    %145 = arith.mulf %143, %144 : vector<8x8xf32>
    %cst_52 = arith.constant dense<0xFF800000> : vector<8xf32>
    %146 = vector.multi_reduction <maximumf>, %145, %cst_52 [1] : vector<8x8xf32> to vector<8xf32>
    %147 = vector.shape_cast %146 : vector<8xf32> to vector<8x1xf32>
    %148 = vector.broadcast %147 : vector<8x1xf32> to vector<8x8xf32>
    %149 = arith.subf %145, %148 : vector<8x8xf32>
    %150 = math.exp %149 : vector<8x8xf32>
    %cst_53 = arith.constant dense<0.000000e+00> : vector<8xf32>
    %151 = vector.multi_reduction <add>, %150, %cst_53 [1] : vector<8x8xf32> to vector<8xf32>
    %152 = vector.shape_cast %151 : vector<8xf32> to vector<8x1xf32>
    %153 = vector.broadcast %152 : vector<8x1xf32> to vector<8x8xf32>
    %154 = arith.divf %150, %153 : vector<8x8xf32>
    %cst_54 = arith.constant dense<0.000000e+00> : vector<8x8xf32>
    %155 = tpu.matmul %154, %141, %cst_54 {dimension_numbers = #tpu.dot_dimension_numbers<[1], [0], [0], [1], [0, 0, 1, 1], [], []>} : vector<8x8xf32>, vector<8x8xf32>, vector<8x8xf32> -> vector<8x8xf32>
    %156 = tpu.concatenate %104, %121, %138, %155 in 1 : vector<8x8xf32>, vector<8x8xf32>, vector<8x8xf32>, vector<8x8xf32> -> vector<8x32xf32>
    %157 = tpu.concatenate %86, %156 in 0 : vector<8x32xf32>, vector<8x32xf32> -> vector<16x32xf32>
    %c0_55 = arith.constant 0 : index
    %c0_56 = arith.constant 0 : index
    %c0_57 = arith.constant 0 : index
    %158 = vector.load %arg5[%c0_55, %c0_56, %c0_57] : memref<2x32x32xf32, #tpu.memory_space<vmem>>, vector<1x32x32xf32>
    %159 = vector.shape_cast %158 : vector<1x32x32xf32> to vector<32x32xf32>
    %cst_58 = arith.constant dense<0.000000e+00> : vector<16x32xf32>
    %160 = tpu.matmul %157, %159, %cst_58 {dimension_numbers = #tpu.dot_dimension_numbers<[1], [0], [0], [1], [0, 0, 1, 1], [], []>} : vector<16x32xf32>, vector<32x32xf32>, vector<16x32xf32> -> vector<16x32xf32>
    %c0_59 = arith.constant 0 : index
    %c0_60 = arith.constant 0 : index
    %c0_61 = arith.constant 0 : index
    %161 = vector.load %arg6[%c0_59, %c0_60, %c0_61] : memref<2x1x32xf32, #tpu.memory_space<vmem>>, vector<1x1x32xf32>
    %162 = vector.shape_cast %161 : vector<1x1x32xf32> to vector<1x32xf32>
    %163 = vector.broadcast %162 : vector<1x32xf32> to vector<16x32xf32>
    %164 = arith.addf %160, %163 : vector<16x32xf32>
    %165 = arith.addf %9, %164 : vector<16x32xf32>
    %c0_62 = arith.constant 0 : index
    %c0_63 = arith.constant 0 : index
    %c0_64 = arith.constant 0 : index
    %166 = vector.load %arg7[%c0_62, %c0_63, %c0_64] : memref<2x1x32xf32, #tpu.memory_space<vmem>>, vector<1x1x32xf32>
    %167 = vector.shape_cast %166 : vector<1x1x32xf32> to vector<1x32xf32>
    %c0_65 = arith.constant 0 : index
    %c0_66 = arith.constant 0 : index
    %c0_67 = arith.constant 0 : index
    %168 = vector.load %arg8[%c0_65, %c0_66, %c0_67] : memref<2x1x32xf32, #tpu.memory_space<vmem>>, vector<1x1x32xf32>
    %169 = vector.shape_cast %168 : vector<1x1x32xf32> to vector<1x32xf32>
    %cst_68 = arith.constant dense<0.000000e+00> : vector<16xf32>
    %170 = vector.multi_reduction <add>, %165, %cst_68 [1] : vector<16x32xf32> to vector<16xf32>
    %171 = vector.shape_cast %170 : vector<16xf32> to vector<16x1xf32>
    %cst_69 = arith.constant 3.200000e+01 : f32
    %172 = vector.broadcast %cst_69 : f32 to vector<16x1xf32>
    %173 = arith.divf %171, %172 : vector<16x1xf32>
    %174 = vector.broadcast %173 : vector<16x1xf32> to vector<16x32xf32>
    %175 = arith.subf %165, %174 : vector<16x32xf32>
    %176 = arith.mulf %175, %175 : vector<16x32xf32>
    %cst_70 = arith.constant dense<0.000000e+00> : vector<16xf32>
    %177 = vector.multi_reduction <add>, %176, %cst_70 [1] : vector<16x32xf32> to vector<16xf32>
    %178 = vector.shape_cast %177 : vector<16xf32> to vector<16x1xf32>
    %cst_71 = arith.constant 3.200000e+01 : f32
    %179 = vector.broadcast %cst_71 : f32 to vector<16x1xf32>
    %180 = arith.divf %178, %179 : vector<16x1xf32>
    %cst_72 = arith.constant 9.99999974E-6 : f32
    %181 = vector.broadcast %cst_72 : f32 to vector<16x1xf32>
    %182 = arith.addf %180, %181 : vector<16x1xf32>
    %183 = math.rsqrt %182 : vector<16x1xf32>
    %184 = vector.broadcast %183 : vector<16x1xf32> to vector<16x32xf32>
    %185 = arith.mulf %175, %184 : vector<16x32xf32>
    %186 = vector.broadcast %167 : vector<1x32xf32> to vector<16x32xf32>
    %187 = arith.mulf %185, %186 : vector<16x32xf32>
    %188 = vector.broadcast %169 : vector<1x32xf32> to vector<16x32xf32>
    %189 = arith.addf %187, %188 : vector<16x32xf32>
    %c0_73 = arith.constant 0 : index
    %c0_74 = arith.constant 0 : index
    %c0_75 = arith.constant 0 : index
    %190 = vector.load %arg9[%c0_73, %c0_74, %c0_75] : memref<2x32x64xf32, #tpu.memory_space<vmem>>, vector<1x32x64xf32>
    %191 = vector.shape_cast %190 : vector<1x32x64xf32> to vector<32x64xf32>
    %cst_76 = arith.constant dense<0.000000e+00> : vector<16x64xf32>
    %192 = tpu.matmul %189, %191, %cst_76 {dimension_numbers = #tpu.dot_dimension_numbers<[1], [0], [0], [1], [0, 0, 1, 1], [], []>} : vector<16x32xf32>, vector<32x64xf32>, vector<16x64xf32> -> vector<16x64xf32>
    %c0_77 = arith.constant 0 : index
    %c0_78 = arith.constant 0 : index
    %c0_79 = arith.constant 0 : index
    %193 = vector.load %arg10[%c0_77, %c0_78, %c0_79] : memref<2x1x64xf32, #tpu.memory_space<vmem>>, vector<1x1x64xf32>
    %194 = vector.shape_cast %193 : vector<1x1x64xf32> to vector<1x64xf32>
    %195 = vector.broadcast %194 : vector<1x64xf32> to vector<16x64xf32>
    %196 = arith.addf %192, %195 : vector<16x64xf32>
    %cst_80 = arith.constant 0.000000e+00 : f32
    %197 = vector.broadcast %cst_80 : f32 to vector<16x64xf32>
    %198 = arith.maximumf %196, %197 : vector<16x64xf32>
    %c0_81 = arith.constant 0 : index
    %c0_82 = arith.constant 0 : index
    %c0_83 = arith.constant 0 : index
    %199 = vector.load %arg11[%c0_81, %c0_82, %c0_83] : memref<2x64x32xf32, #tpu.memory_space<vmem>>, vector<1x64x32xf32>
    %200 = vector.shape_cast %199 : vector<1x64x32xf32> to vector<64x32xf32>
    %cst_84 = arith.constant dense<0.000000e+00> : vector<16x32xf32>
    %201 = tpu.matmul %198, %200, %cst_84 {dimension_numbers = #tpu.dot_dimension_numbers<[1], [0], [0], [1], [0, 0, 1, 1], [], []>} : vector<16x64xf32>, vector<64x32xf32>, vector<16x32xf32> -> vector<16x32xf32>
    %c0_85 = arith.constant 0 : index
    %c0_86 = arith.constant 0 : index
    %c0_87 = arith.constant 0 : index
    %202 = vector.load %arg12[%c0_85, %c0_86, %c0_87] : memref<2x1x32xf32, #tpu.memory_space<vmem>>, vector<1x1x32xf32>
    %203 = vector.shape_cast %202 : vector<1x1x32xf32> to vector<1x32xf32>
    %204 = vector.broadcast %203 : vector<1x32xf32> to vector<16x32xf32>
    %205 = arith.addf %201, %204 : vector<16x32xf32>
    %206 = arith.addf %189, %205 : vector<16x32xf32>
    %c0_88 = arith.constant 0 : index
    %c0_89 = arith.constant 0 : index
    %c0_90 = arith.constant 0 : index
    %207 = vector.load %arg13[%c0_88, %c0_89, %c0_90] : memref<2x1x32xf32, #tpu.memory_space<vmem>>, vector<1x1x32xf32>
    %208 = vector.shape_cast %207 : vector<1x1x32xf32> to vector<1x32xf32>
    %c0_91 = arith.constant 0 : index
    %c0_92 = arith.constant 0 : index
    %c0_93 = arith.constant 0 : index
    %209 = vector.load %arg14[%c0_91, %c0_92, %c0_93] : memref<2x1x32xf32, #tpu.memory_space<vmem>>, vector<1x1x32xf32>
    %210 = vector.shape_cast %209 : vector<1x1x32xf32> to vector<1x32xf32>
    %cst_94 = arith.constant dense<0.000000e+00> : vector<16xf32>
    %211 = vector.multi_reduction <add>, %206, %cst_94 [1] : vector<16x32xf32> to vector<16xf32>
    %212 = vector.shape_cast %211 : vector<16xf32> to vector<16x1xf32>
    %cst_95 = arith.constant 3.200000e+01 : f32
    %213 = vector.broadcast %cst_95 : f32 to vector<16x1xf32>
    %214 = arith.divf %212, %213 : vector<16x1xf32>
    %215 = vector.broadcast %214 : vector<16x1xf32> to vector<16x32xf32>
    %216 = arith.subf %206, %215 : vector<16x32xf32>
    %217 = arith.mulf %216, %216 : vector<16x32xf32>
    %cst_96 = arith.constant dense<0.000000e+00> : vector<16xf32>
    %218 = vector.multi_reduction <add>, %217, %cst_96 [1] : vector<16x32xf32> to vector<16xf32>
    %219 = vector.shape_cast %218 : vector<16xf32> to vector<16x1xf32>
    %cst_97 = arith.constant 3.200000e+01 : f32
    %220 = vector.broadcast %cst_97 : f32 to vector<16x1xf32>
    %221 = arith.divf %219, %220 : vector<16x1xf32>
    %cst_98 = arith.constant 9.99999974E-6 : f32
    %222 = vector.broadcast %cst_98 : f32 to vector<16x1xf32>
    %223 = arith.addf %221, %222 : vector<16x1xf32>
    %224 = math.rsqrt %223 : vector<16x1xf32>
    %225 = vector.broadcast %224 : vector<16x1xf32> to vector<16x32xf32>
    %226 = arith.mulf %216, %225 : vector<16x32xf32>
    %227 = vector.broadcast %208 : vector<1x32xf32> to vector<16x32xf32>
    %228 = arith.mulf %226, %227 : vector<16x32xf32>
    %229 = vector.broadcast %210 : vector<1x32xf32> to vector<16x32xf32>
    %230 = arith.addf %228, %229 : vector<16x32xf32>
    %c1_99 = arith.constant 1 : index
    %c0_100 = arith.constant 0 : index
    %c0_101 = arith.constant 0 : index
    %231 = vector.load %arg3[%c1_99, %c0_100, %c0_101] : memref<2x32x96xf32, #tpu.memory_space<vmem>>, vector<1x32x96xf32>
    %232 = vector.shape_cast %231 : vector<1x32x96xf32> to vector<32x96xf32>
    %cst_102 = arith.constant dense<0.000000e+00> : vector<16x96xf32>
    %233 = tpu.matmul %230, %232, %cst_102 {dimension_numbers = #tpu.dot_dimension_numbers<[1], [0], [0], [1], [0, 0, 1, 1], [], []>} : vector<16x32xf32>, vector<32x96xf32>, vector<16x96xf32> -> vector<16x96xf32>
    %c1_103 = arith.constant 1 : index
    %c0_104 = arith.constant 0 : index
    %c0_105 = arith.constant 0 : index
    %234 = vector.load %arg4[%c1_103, %c0_104, %c0_105] : memref<2x1x96xf32, #tpu.memory_space<vmem>>, vector<1x1x96xf32>
    %235 = vector.shape_cast %234 : vector<1x1x96xf32> to vector<1x96xf32>
    %236 = vector.broadcast %235 : vector<1x96xf32> to vector<16x96xf32>
    %237 = arith.addf %233, %236 : vector<16x96xf32>
    %238 = vector.extract_strided_slice %237 {offsets = [0, 0], sizes = [8, 96], strides = [1, 1]} : vector<16x96xf32> to vector<8x96xf32>
    %239 = vector.extract_strided_slice %238 {offsets = [0, 0], sizes = [8, 8], strides = [1, 1]} : vector<8x96xf32> to vector<8x8xf32>
    %240 = vector.extract_strided_slice %238 {offsets = [0, 32], sizes = [8, 8], strides = [1, 1]} : vector<8x96xf32> to vector<8x8xf32>
    %241 = vector.extract_strided_slice %238 {offsets = [0, 64], sizes = [8, 8], strides = [1, 1]} : vector<8x96xf32> to vector<8x8xf32>
    %242 = tpu.transpose %240, [1, 0] : vector<8x8xf32> -> vector<8x8xf32>
    %cst_106 = arith.constant dense<0.000000e+00> : vector<8x8xf32>
    %243 = tpu.matmul %239, %242, %cst_106 {dimension_numbers = #tpu.dot_dimension_numbers<[1], [0], [0], [1], [0, 0, 1, 1], [], []>} : vector<8x8xf32>, vector<8x8xf32>, vector<8x8xf32> -> vector<8x8xf32>
    %cst_107 = arith.constant 0.353553385 : f32
    %244 = vector.broadcast %cst_107 : f32 to vector<8x8xf32>
    %245 = arith.mulf %243, %244 : vector<8x8xf32>
    %cst_108 = arith.constant dense<0xFF800000> : vector<8xf32>
    %246 = vector.multi_reduction <maximumf>, %245, %cst_108 [1] : vector<8x8xf32> to vector<8xf32>
    %247 = vector.shape_cast %246 : vector<8xf32> to vector<8x1xf32>
    %248 = vector.broadcast %247 : vector<8x1xf32> to vector<8x8xf32>
    %249 = arith.subf %245, %248 : vector<8x8xf32>
    %250 = math.exp %249 : vector<8x8xf32>
    %cst_109 = arith.constant dense<0.000000e+00> : vector<8xf32>
    %251 = vector.multi_reduction <add>, %250, %cst_109 [1] : vector<8x8xf32> to vector<8xf32>
    %252 = vector.shape_cast %251 : vector<8xf32> to vector<8x1xf32>
    %253 = vector.broadcast %252 : vector<8x1xf32> to vector<8x8xf32>
    %254 = arith.divf %250, %253 : vector<8x8xf32>
    %cst_110 = arith.constant dense<0.000000e+00> : vector<8x8xf32>
    %255 = tpu.matmul %254, %241, %cst_110 {dimension_numbers = #tpu.dot_dimension_numbers<[1], [0], [0], [1], [0, 0, 1, 1], [], []>} : vector<8x8xf32>, vector<8x8xf32>, vector<8x8xf32> -> vector<8x8xf32>
    %256 = vector.extract_strided_slice %238 {offsets = [0, 8], sizes = [8, 8], strides = [1, 1]} : vector<8x96xf32> to vector<8x8xf32>
    %257 = vector.extract_strided_slice %238 {offsets = [0, 40], sizes = [8, 8], strides = [1, 1]} : vector<8x96xf32> to vector<8x8xf32>
    %258 = vector.extract_strided_slice %238 {offsets = [0, 72], sizes = [8, 8], strides = [1, 1]} : vector<8x96xf32> to vector<8x8xf32>
    %259 = tpu.transpose %257, [1, 0] : vector<8x8xf32> -> vector<8x8xf32>
    %cst_111 = arith.constant dense<0.000000e+00> : vector<8x8xf32>
    %260 = tpu.matmul %256, %259, %cst_111 {dimension_numbers = #tpu.dot_dimension_numbers<[1], [0], [0], [1], [0, 0, 1, 1], [], []>} : vector<8x8xf32>, vector<8x8xf32>, vector<8x8xf32> -> vector<8x8xf32>
    %cst_112 = arith.constant 0.353553385 : f32
    %261 = vector.broadcast %cst_112 : f32 to vector<8x8xf32>
    %262 = arith.mulf %260, %261 : vector<8x8xf32>
    %cst_113 = arith.constant dense<0xFF800000> : vector<8xf32>
    %263 = vector.multi_reduction <maximumf>, %262, %cst_113 [1] : vector<8x8xf32> to vector<8xf32>
    %264 = vector.shape_cast %263 : vector<8xf32> to vector<8x1xf32>
    %265 = vector.broadcast %264 : vector<8x1xf32> to vector<8x8xf32>
    %266 = arith.subf %262, %265 : vector<8x8xf32>
    %267 = math.exp %266 : vector<8x8xf32>
    %cst_114 = arith.constant dense<0.000000e+00> : vector<8xf32>
    %268 = vector.multi_reduction <add>, %267, %cst_114 [1] : vector<8x8xf32> to vector<8xf32>
    %269 = vector.shape_cast %268 : vector<8xf32> to vector<8x1xf32>
    %270 = vector.broadcast %269 : vector<8x1xf32> to vector<8x8xf32>
    %271 = arith.divf %267, %270 : vector<8x8xf32>
    %cst_115 = arith.constant dense<0.000000e+00> : vector<8x8xf32>
    %272 = tpu.matmul %271, %258, %cst_115 {dimension_numbers = #tpu.dot_dimension_numbers<[1], [0], [0], [1], [0, 0, 1, 1], [], []>} : vector<8x8xf32>, vector<8x8xf32>, vector<8x8xf32> -> vector<8x8xf32>
    %273 = vector.extract_strided_slice %238 {offsets = [0, 16], sizes = [8, 8], strides = [1, 1]} : vector<8x96xf32> to vector<8x8xf32>
    %274 = vector.extract_strided_slice %238 {offsets = [0, 48], sizes = [8, 8], strides = [1, 1]} : vector<8x96xf32> to vector<8x8xf32>
    %275 = vector.extract_strided_slice %238 {offsets = [0, 80], sizes = [8, 8], strides = [1, 1]} : vector<8x96xf32> to vector<8x8xf32>
    %276 = tpu.transpose %274, [1, 0] : vector<8x8xf32> -> vector<8x8xf32>
    %cst_116 = arith.constant dense<0.000000e+00> : vector<8x8xf32>
    %277 = tpu.matmul %273, %276, %cst_116 {dimension_numbers = #tpu.dot_dimension_numbers<[1], [0], [0], [1], [0, 0, 1, 1], [], []>} : vector<8x8xf32>, vector<8x8xf32>, vector<8x8xf32> -> vector<8x8xf32>
    %cst_117 = arith.constant 0.353553385 : f32
    %278 = vector.broadcast %cst_117 : f32 to vector<8x8xf32>
    %279 = arith.mulf %277, %278 : vector<8x8xf32>
    %cst_118 = arith.constant dense<0xFF800000> : vector<8xf32>
    %280 = vector.multi_reduction <maximumf>, %279, %cst_118 [1] : vector<8x8xf32> to vector<8xf32>
    %281 = vector.shape_cast %280 : vector<8xf32> to vector<8x1xf32>
    %282 = vector.broadcast %281 : vector<8x1xf32> to vector<8x8xf32>
    %283 = arith.subf %279, %282 : vector<8x8xf32>
    %284 = math.exp %283 : vector<8x8xf32>
    %cst_119 = arith.constant dense<0.000000e+00> : vector<8xf32>
    %285 = vector.multi_reduction <add>, %284, %cst_119 [1] : vector<8x8xf32> to vector<8xf32>
    %286 = vector.shape_cast %285 : vector<8xf32> to vector<8x1xf32>
    %287 = vector.broadcast %286 : vector<8x1xf32> to vector<8x8xf32>
    %288 = arith.divf %284, %287 : vector<8x8xf32>
    %cst_120 = arith.constant dense<0.000000e+00> : vector<8x8xf32>
    %289 = tpu.matmul %288, %275, %cst_120 {dimension_numbers = #tpu.dot_dimension_numbers<[1], [0], [0], [1], [0, 0, 1, 1], [], []>} : vector<8x8xf32>, vector<8x8xf32>, vector<8x8xf32> -> vector<8x8xf32>
    %290 = vector.extract_strided_slice %238 {offsets = [0, 24], sizes = [8, 8], strides = [1, 1]} : vector<8x96xf32> to vector<8x8xf32>
    %291 = vector.extract_strided_slice %238 {offsets = [0, 56], sizes = [8, 8], strides = [1, 1]} : vector<8x96xf32> to vector<8x8xf32>
    %292 = vector.extract_strided_slice %238 {offsets = [0, 88], sizes = [8, 8], strides = [1, 1]} : vector<8x96xf32> to vector<8x8xf32>
    %293 = tpu.transpose %291, [1, 0] : vector<8x8xf32> -> vector<8x8xf32>
    %cst_121 = arith.constant dense<0.000000e+00> : vector<8x8xf32>
    %294 = tpu.matmul %290, %293, %cst_121 {dimension_numbers = #tpu.dot_dimension_numbers<[1], [0], [0], [1], [0, 0, 1, 1], [], []>} : vector<8x8xf32>, vector<8x8xf32>, vector<8x8xf32> -> vector<8x8xf32>
    %cst_122 = arith.constant 0.353553385 : f32
    %295 = vector.broadcast %cst_122 : f32 to vector<8x8xf32>
    %296 = arith.mulf %294, %295 : vector<8x8xf32>
    %cst_123 = arith.constant dense<0xFF800000> : vector<8xf32>
    %297 = vector.multi_reduction <maximumf>, %296, %cst_123 [1] : vector<8x8xf32> to vector<8xf32>
    %298 = vector.shape_cast %297 : vector<8xf32> to vector<8x1xf32>
    %299 = vector.broadcast %298 : vector<8x1xf32> to vector<8x8xf32>
    %300 = arith.subf %296, %299 : vector<8x8xf32>
    %301 = math.exp %300 : vector<8x8xf32>
    %cst_124 = arith.constant dense<0.000000e+00> : vector<8xf32>
    %302 = vector.multi_reduction <add>, %301, %cst_124 [1] : vector<8x8xf32> to vector<8xf32>
    %303 = vector.shape_cast %302 : vector<8xf32> to vector<8x1xf32>
    %304 = vector.broadcast %303 : vector<8x1xf32> to vector<8x8xf32>
    %305 = arith.divf %301, %304 : vector<8x8xf32>
    %cst_125 = arith.constant dense<0.000000e+00> : vector<8x8xf32>
    %306 = tpu.matmul %305, %292, %cst_125 {dimension_numbers = #tpu.dot_dimension_numbers<[1], [0], [0], [1], [0, 0, 1, 1], [], []>} : vector<8x8xf32>, vector<8x8xf32>, vector<8x8xf32> -> vector<8x8xf32>
    %307 = tpu.concatenate %255, %272, %289, %306 in 1 : vector<8x8xf32>, vector<8x8xf32>, vector<8x8xf32>, vector<8x8xf32> -> vector<8x32xf32>
    %308 = vector.extract_strided_slice %237 {offsets = [8, 0], sizes = [8, 96], strides = [1, 1]} : vector<16x96xf32> to vector<8x96xf32>
    %309 = vector.extract_strided_slice %308 {offsets = [0, 0], sizes = [8, 8], strides = [1, 1]} : vector<8x96xf32> to vector<8x8xf32>
    %310 = vector.extract_strided_slice %308 {offsets = [0, 32], sizes = [8, 8], strides = [1, 1]} : vector<8x96xf32> to vector<8x8xf32>
    %311 = vector.extract_strided_slice %308 {offsets = [0, 64], sizes = [8, 8], strides = [1, 1]} : vector<8x96xf32> to vector<8x8xf32>
    %312 = tpu.transpose %310, [1, 0] : vector<8x8xf32> -> vector<8x8xf32>
    %cst_126 = arith.constant dense<0.000000e+00> : vector<8x8xf32>
    %313 = tpu.matmul %309, %312, %cst_126 {dimension_numbers = #tpu.dot_dimension_numbers<[1], [0], [0], [1], [0, 0, 1, 1], [], []>} : vector<8x8xf32>, vector<8x8xf32>, vector<8x8xf32> -> vector<8x8xf32>
    %cst_127 = arith.constant 0.353553385 : f32
    %314 = vector.broadcast %cst_127 : f32 to vector<8x8xf32>
    %315 = arith.mulf %313, %314 : vector<8x8xf32>
    %cst_128 = arith.constant dense<0xFF800000> : vector<8xf32>
    %316 = vector.multi_reduction <maximumf>, %315, %cst_128 [1] : vector<8x8xf32> to vector<8xf32>
    %317 = vector.shape_cast %316 : vector<8xf32> to vector<8x1xf32>
    %318 = vector.broadcast %317 : vector<8x1xf32> to vector<8x8xf32>
    %319 = arith.subf %315, %318 : vector<8x8xf32>
    %320 = math.exp %319 : vector<8x8xf32>
    %cst_129 = arith.constant dense<0.000000e+00> : vector<8xf32>
    %321 = vector.multi_reduction <add>, %320, %cst_129 [1] : vector<8x8xf32> to vector<8xf32>
    %322 = vector.shape_cast %321 : vector<8xf32> to vector<8x1xf32>
    %323 = vector.broadcast %322 : vector<8x1xf32> to vector<8x8xf32>
    %324 = arith.divf %320, %323 : vector<8x8xf32>
    %cst_130 = arith.constant dense<0.000000e+00> : vector<8x8xf32>
    %325 = tpu.matmul %324, %311, %cst_130 {dimension_numbers = #tpu.dot_dimension_numbers<[1], [0], [0], [1], [0, 0, 1, 1], [], []>} : vector<8x8xf32>, vector<8x8xf32>, vector<8x8xf32> -> vector<8x8xf32>
    %326 = vector.extract_strided_slice %308 {offsets = [0, 8], sizes = [8, 8], strides = [1, 1]} : vector<8x96xf32> to vector<8x8xf32>
    %327 = vector.extract_strided_slice %308 {offsets = [0, 40], sizes = [8, 8], strides = [1, 1]} : vector<8x96xf32> to vector<8x8xf32>
    %328 = vector.extract_strided_slice %308 {offsets = [0, 72], sizes = [8, 8], strides = [1, 1]} : vector<8x96xf32> to vector<8x8xf32>
    %329 = tpu.transpose %327, [1, 0] : vector<8x8xf32> -> vector<8x8xf32>
    %cst_131 = arith.constant dense<0.000000e+00> : vector<8x8xf32>
    %330 = tpu.matmul %326, %329, %cst_131 {dimension_numbers = #tpu.dot_dimension_numbers<[1], [0], [0], [1], [0, 0, 1, 1], [], []>} : vector<8x8xf32>, vector<8x8xf32>, vector<8x8xf32> -> vector<8x8xf32>
    %cst_132 = arith.constant 0.353553385 : f32
    %331 = vector.broadcast %cst_132 : f32 to vector<8x8xf32>
    %332 = arith.mulf %330, %331 : vector<8x8xf32>
    %cst_133 = arith.constant dense<0xFF800000> : vector<8xf32>
    %333 = vector.multi_reduction <maximumf>, %332, %cst_133 [1] : vector<8x8xf32> to vector<8xf32>
    %334 = vector.shape_cast %333 : vector<8xf32> to vector<8x1xf32>
    %335 = vector.broadcast %334 : vector<8x1xf32> to vector<8x8xf32>
    %336 = arith.subf %332, %335 : vector<8x8xf32>
    %337 = math.exp %336 : vector<8x8xf32>
    %cst_134 = arith.constant dense<0.000000e+00> : vector<8xf32>
    %338 = vector.multi_reduction <add>, %337, %cst_134 [1] : vector<8x8xf32> to vector<8xf32>
    %339 = vector.shape_cast %338 : vector<8xf32> to vector<8x1xf32>
    %340 = vector.broadcast %339 : vector<8x1xf32> to vector<8x8xf32>
    %341 = arith.divf %337, %340 : vector<8x8xf32>
    %cst_135 = arith.constant dense<0.000000e+00> : vector<8x8xf32>
    %342 = tpu.matmul %341, %328, %cst_135 {dimension_numbers = #tpu.dot_dimension_numbers<[1], [0], [0], [1], [0, 0, 1, 1], [], []>} : vector<8x8xf32>, vector<8x8xf32>, vector<8x8xf32> -> vector<8x8xf32>
    %343 = vector.extract_strided_slice %308 {offsets = [0, 16], sizes = [8, 8], strides = [1, 1]} : vector<8x96xf32> to vector<8x8xf32>
    %344 = vector.extract_strided_slice %308 {offsets = [0, 48], sizes = [8, 8], strides = [1, 1]} : vector<8x96xf32> to vector<8x8xf32>
    %345 = vector.extract_strided_slice %308 {offsets = [0, 80], sizes = [8, 8], strides = [1, 1]} : vector<8x96xf32> to vector<8x8xf32>
    %346 = tpu.transpose %344, [1, 0] : vector<8x8xf32> -> vector<8x8xf32>
    %cst_136 = arith.constant dense<0.000000e+00> : vector<8x8xf32>
    %347 = tpu.matmul %343, %346, %cst_136 {dimension_numbers = #tpu.dot_dimension_numbers<[1], [0], [0], [1], [0, 0, 1, 1], [], []>} : vector<8x8xf32>, vector<8x8xf32>, vector<8x8xf32> -> vector<8x8xf32>
    %cst_137 = arith.constant 0.353553385 : f32
    %348 = vector.broadcast %cst_137 : f32 to vector<8x8xf32>
    %349 = arith.mulf %347, %348 : vector<8x8xf32>
    %cst_138 = arith.constant dense<0xFF800000> : vector<8xf32>
    %350 = vector.multi_reduction <maximumf>, %349, %cst_138 [1] : vector<8x8xf32> to vector<8xf32>
    %351 = vector.shape_cast %350 : vector<8xf32> to vector<8x1xf32>
    %352 = vector.broadcast %351 : vector<8x1xf32> to vector<8x8xf32>
    %353 = arith.subf %349, %352 : vector<8x8xf32>
    %354 = math.exp %353 : vector<8x8xf32>
    %cst_139 = arith.constant dense<0.000000e+00> : vector<8xf32>
    %355 = vector.multi_reduction <add>, %354, %cst_139 [1] : vector<8x8xf32> to vector<8xf32>
    %356 = vector.shape_cast %355 : vector<8xf32> to vector<8x1xf32>
    %357 = vector.broadcast %356 : vector<8x1xf32> to vector<8x8xf32>
    %358 = arith.divf %354, %357 : vector<8x8xf32>
    %cst_140 = arith.constant dense<0.000000e+00> : vector<8x8xf32>
    %359 = tpu.matmul %358, %345, %cst_140 {dimension_numbers = #tpu.dot_dimension_numbers<[1], [0], [0], [1], [0, 0, 1, 1], [], []>} : vector<8x8xf32>, vector<8x8xf32>, vector<8x8xf32> -> vector<8x8xf32>
    %360 = vector.extract_strided_slice %308 {offsets = [0, 24], sizes = [8, 8], strides = [1, 1]} : vector<8x96xf32> to vector<8x8xf32>
    %361 = vector.extract_strided_slice %308 {offsets = [0, 56], sizes = [8, 8], strides = [1, 1]} : vector<8x96xf32> to vector<8x8xf32>
    %362 = vector.extract_strided_slice %308 {offsets = [0, 88], sizes = [8, 8], strides = [1, 1]} : vector<8x96xf32> to vector<8x8xf32>
    %363 = tpu.transpose %361, [1, 0] : vector<8x8xf32> -> vector<8x8xf32>
    %cst_141 = arith.constant dense<0.000000e+00> : vector<8x8xf32>
    %364 = tpu.matmul %360, %363, %cst_141 {dimension_numbers = #tpu.dot_dimension_numbers<[1], [0], [0], [1], [0, 0, 1, 1], [], []>} : vector<8x8xf32>, vector<8x8xf32>, vector<8x8xf32> -> vector<8x8xf32>
    %cst_142 = arith.constant 0.353553385 : f32
    %365 = vector.broadcast %cst_142 : f32 to vector<8x8xf32>
    %366 = arith.mulf %364, %365 : vector<8x8xf32>
    %cst_143 = arith.constant dense<0xFF800000> : vector<8xf32>
    %367 = vector.multi_reduction <maximumf>, %366, %cst_143 [1] : vector<8x8xf32> to vector<8xf32>
    %368 = vector.shape_cast %367 : vector<8xf32> to vector<8x1xf32>
    %369 = vector.broadcast %368 : vector<8x1xf32> to vector<8x8xf32>
    %370 = arith.subf %366, %369 : vector<8x8xf32>
    %371 = math.exp %370 : vector<8x8xf32>
    %cst_144 = arith.constant dense<0.000000e+00> : vector<8xf32>
    %372 = vector.multi_reduction <add>, %371, %cst_144 [1] : vector<8x8xf32> to vector<8xf32>
    %373 = vector.shape_cast %372 : vector<8xf32> to vector<8x1xf32>
    %374 = vector.broadcast %373 : vector<8x1xf32> to vector<8x8xf32>
    %375 = arith.divf %371, %374 : vector<8x8xf32>
    %cst_145 = arith.constant dense<0.000000e+00> : vector<8x8xf32>
    %376 = tpu.matmul %375, %362, %cst_145 {dimension_numbers = #tpu.dot_dimension_numbers<[1], [0], [0], [1], [0, 0, 1, 1], [], []>} : vector<8x8xf32>, vector<8x8xf32>, vector<8x8xf32> -> vector<8x8xf32>
    %377 = tpu.concatenate %325, %342, %359, %376 in 1 : vector<8x8xf32>, vector<8x8xf32>, vector<8x8xf32>, vector<8x8xf32> -> vector<8x32xf32>
    %378 = tpu.concatenate %307, %377 in 0 : vector<8x32xf32>, vector<8x32xf32> -> vector<16x32xf32>
    %c1_146 = arith.constant 1 : index
    %c0_147 = arith.constant 0 : index
    %c0_148 = arith.constant 0 : index
    %379 = vector.load %arg5[%c1_146, %c0_147, %c0_148] : memref<2x32x32xf32, #tpu.memory_space<vmem>>, vector<1x32x32xf32>
    %380 = vector.shape_cast %379 : vector<1x32x32xf32> to vector<32x32xf32>
    %cst_149 = arith.constant dense<0.000000e+00> : vector<16x32xf32>
    %381 = tpu.matmul %378, %380, %cst_149 {dimension_numbers = #tpu.dot_dimension_numbers<[1], [0], [0], [1], [0, 0, 1, 1], [], []>} : vector<16x32xf32>, vector<32x32xf32>, vector<16x32xf32> -> vector<16x32xf32>
    %c1_150 = arith.constant 1 : index
    %c0_151 = arith.constant 0 : index
    %c0_152 = arith.constant 0 : index
    %382 = vector.load %arg6[%c1_150, %c0_151, %c0_152] : memref<2x1x32xf32, #tpu.memory_space<vmem>>, vector<1x1x32xf32>
    %383 = vector.shape_cast %382 : vector<1x1x32xf32> to vector<1x32xf32>
    %384 = vector.broadcast %383 : vector<1x32xf32> to vector<16x32xf32>
    %385 = arith.addf %381, %384 : vector<16x32xf32>
    %386 = arith.addf %230, %385 : vector<16x32xf32>
    %c1_153 = arith.constant 1 : index
    %c0_154 = arith.constant 0 : index
    %c0_155 = arith.constant 0 : index
    %387 = vector.load %arg7[%c1_153, %c0_154, %c0_155] : memref<2x1x32xf32, #tpu.memory_space<vmem>>, vector<1x1x32xf32>
    %388 = vector.shape_cast %387 : vector<1x1x32xf32> to vector<1x32xf32>
    %c1_156 = arith.constant 1 : index
    %c0_157 = arith.constant 0 : index
    %c0_158 = arith.constant 0 : index
    %389 = vector.load %arg8[%c1_156, %c0_157, %c0_158] : memref<2x1x32xf32, #tpu.memory_space<vmem>>, vector<1x1x32xf32>
    %390 = vector.shape_cast %389 : vector<1x1x32xf32> to vector<1x32xf32>
    %cst_159 = arith.constant dense<0.000000e+00> : vector<16xf32>
    %391 = vector.multi_reduction <add>, %386, %cst_159 [1] : vector<16x32xf32> to vector<16xf32>
    %392 = vector.shape_cast %391 : vector<16xf32> to vector<16x1xf32>
    %cst_160 = arith.constant 3.200000e+01 : f32
    %393 = vector.broadcast %cst_160 : f32 to vector<16x1xf32>
    %394 = arith.divf %392, %393 : vector<16x1xf32>
    %395 = vector.broadcast %394 : vector<16x1xf32> to vector<16x32xf32>
    %396 = arith.subf %386, %395 : vector<16x32xf32>
    %397 = arith.mulf %396, %396 : vector<16x32xf32>
    %cst_161 = arith.constant dense<0.000000e+00> : vector<16xf32>
    %398 = vector.multi_reduction <add>, %397, %cst_161 [1] : vector<16x32xf32> to vector<16xf32>
    %399 = vector.shape_cast %398 : vector<16xf32> to vector<16x1xf32>
    %cst_162 = arith.constant 3.200000e+01 : f32
    %400 = vector.broadcast %cst_162 : f32 to vector<16x1xf32>
    %401 = arith.divf %399, %400 : vector<16x1xf32>
    %cst_163 = arith.constant 9.99999974E-6 : f32
    %402 = vector.broadcast %cst_163 : f32 to vector<16x1xf32>
    %403 = arith.addf %401, %402 : vector<16x1xf32>
    %404 = math.rsqrt %403 : vector<16x1xf32>
    %405 = vector.broadcast %404 : vector<16x1xf32> to vector<16x32xf32>
    %406 = arith.mulf %396, %405 : vector<16x32xf32>
    %407 = vector.broadcast %388 : vector<1x32xf32> to vector<16x32xf32>
    %408 = arith.mulf %406, %407 : vector<16x32xf32>
    %409 = vector.broadcast %390 : vector<1x32xf32> to vector<16x32xf32>
    %410 = arith.addf %408, %409 : vector<16x32xf32>
    %c1_164 = arith.constant 1 : index
    %c0_165 = arith.constant 0 : index
    %c0_166 = arith.constant 0 : index
    %411 = vector.load %arg9[%c1_164, %c0_165, %c0_166] : memref<2x32x64xf32, #tpu.memory_space<vmem>>, vector<1x32x64xf32>
    %412 = vector.shape_cast %411 : vector<1x32x64xf32> to vector<32x64xf32>
    %cst_167 = arith.constant dense<0.000000e+00> : vector<16x64xf32>
    %413 = tpu.matmul %410, %412, %cst_167 {dimension_numbers = #tpu.dot_dimension_numbers<[1], [0], [0], [1], [0, 0, 1, 1], [], []>} : vector<16x32xf32>, vector<32x64xf32>, vector<16x64xf32> -> vector<16x64xf32>
    %c1_168 = arith.constant 1 : index
    %c0_169 = arith.constant 0 : index
    %c0_170 = arith.constant 0 : index
    %414 = vector.load %arg10[%c1_168, %c0_169, %c0_170] : memref<2x1x64xf32, #tpu.memory_space<vmem>>, vector<1x1x64xf32>
    %415 = vector.shape_cast %414 : vector<1x1x64xf32> to vector<1x64xf32>
    %416 = vector.broadcast %415 : vector<1x64xf32> to vector<16x64xf32>
    %417 = arith.addf %413, %416 : vector<16x64xf32>
    %cst_171 = arith.constant 0.000000e+00 : f32
    %418 = vector.broadcast %cst_171 : f32 to vector<16x64xf32>
    %419 = arith.maximumf %417, %418 : vector<16x64xf32>
    %c1_172 = arith.constant 1 : index
    %c0_173 = arith.constant 0 : index
    %c0_174 = arith.constant 0 : index
    %420 = vector.load %arg11[%c1_172, %c0_173, %c0_174] : memref<2x64x32xf32, #tpu.memory_space<vmem>>, vector<1x64x32xf32>
    %421 = vector.shape_cast %420 : vector<1x64x32xf32> to vector<64x32xf32>
    %cst_175 = arith.constant dense<0.000000e+00> : vector<16x32xf32>
    %422 = tpu.matmul %419, %421, %cst_175 {dimension_numbers = #tpu.dot_dimension_numbers<[1], [0], [0], [1], [0, 0, 1, 1], [], []>} : vector<16x64xf32>, vector<64x32xf32>, vector<16x32xf32> -> vector<16x32xf32>
    %c1_176 = arith.constant 1 : index
    %c0_177 = arith.constant 0 : index
    %c0_178 = arith.constant 0 : index
    %423 = vector.load %arg12[%c1_176, %c0_177, %c0_178] : memref<2x1x32xf32, #tpu.memory_space<vmem>>, vector<1x1x32xf32>
    %424 = vector.shape_cast %423 : vector<1x1x32xf32> to vector<1x32xf32>
    %425 = vector.broadcast %424 : vector<1x32xf32> to vector<16x32xf32>
    %426 = arith.addf %422, %425 : vector<16x32xf32>
    %427 = arith.addf %410, %426 : vector<16x32xf32>
    %c1_179 = arith.constant 1 : index
    %c0_180 = arith.constant 0 : index
    %c0_181 = arith.constant 0 : index
    %428 = vector.load %arg13[%c1_179, %c0_180, %c0_181] : memref<2x1x32xf32, #tpu.memory_space<vmem>>, vector<1x1x32xf32>
    %429 = vector.shape_cast %428 : vector<1x1x32xf32> to vector<1x32xf32>
    %c1_182 = arith.constant 1 : index
    %c0_183 = arith.constant 0 : index
    %c0_184 = arith.constant 0 : index
    %430 = vector.load %arg14[%c1_182, %c0_183, %c0_184] : memref<2x1x32xf32, #tpu.memory_space<vmem>>, vector<1x1x32xf32>
    %431 = vector.shape_cast %430 : vector<1x1x32xf32> to vector<1x32xf32>
    %cst_185 = arith.constant dense<0.000000e+00> : vector<16xf32>
    %432 = vector.multi_reduction <add>, %427, %cst_185 [1] : vector<16x32xf32> to vector<16xf32>
    %433 = vector.shape_cast %432 : vector<16xf32> to vector<16x1xf32>
    %cst_186 = arith.constant 3.200000e+01 : f32
    %434 = vector.broadcast %cst_186 : f32 to vector<16x1xf32>
    %435 = arith.divf %433, %434 : vector<16x1xf32>
    %436 = vector.broadcast %435 : vector<16x1xf32> to vector<16x32xf32>
    %437 = arith.subf %427, %436 : vector<16x32xf32>
    %438 = arith.mulf %437, %437 : vector<16x32xf32>
    %cst_187 = arith.constant dense<0.000000e+00> : vector<16xf32>
    %439 = vector.multi_reduction <add>, %438, %cst_187 [1] : vector<16x32xf32> to vector<16xf32>
    %440 = vector.shape_cast %439 : vector<16xf32> to vector<16x1xf32>
    %cst_188 = arith.constant 3.200000e+01 : f32
    %441 = vector.broadcast %cst_188 : f32 to vector<16x1xf32>
    %442 = arith.divf %440, %441 : vector<16x1xf32>
    %cst_189 = arith.constant 9.99999974E-6 : f32
    %443 = vector.broadcast %cst_189 : f32 to vector<16x1xf32>
    %444 = arith.addf %442, %443 : vector<16x1xf32>
    %445 = math.rsqrt %444 : vector<16x1xf32>
    %446 = vector.broadcast %445 : vector<16x1xf32> to vector<16x32xf32>
    %447 = arith.mulf %437, %446 : vector<16x32xf32>
    %448 = vector.broadcast %429 : vector<1x32xf32> to vector<16x32xf32>
    %449 = arith.mulf %447, %448 : vector<16x32xf32>
    %450 = vector.broadcast %431 : vector<1x32xf32> to vector<16x32xf32>
    %451 = arith.addf %449, %450 : vector<16x32xf32>
    %c0_190 = arith.constant 0 : index
    %c0_191 = arith.constant 0 : index
    %452 = vector.load %arg15[%c0_190, %c0_191] : memref<1x32xf32, #tpu.memory_space<vmem>>, vector<1x32xf32>
    %c0_192 = arith.constant 0 : index
    %c0_193 = arith.constant 0 : index
    %453 = vector.load %arg16[%c0_192, %c0_193] : memref<1x32xf32, #tpu.memory_space<vmem>>, vector<1x32xf32>
    %cst_194 = arith.constant dense<0.000000e+00> : vector<16xf32>
    %454 = vector.multi_reduction <add>, %451, %cst_194 [1] : vector<16x32xf32> to vector<16xf32>
    %455 = vector.shape_cast %454 : vector<16xf32> to vector<16x1xf32>
    %cst_195 = arith.constant 3.200000e+01 : f32
    %456 = vector.broadcast %cst_195 : f32 to vector<16x1xf32>
    %457 = arith.divf %455, %456 : vector<16x1xf32>
    %458 = vector.broadcast %457 : vector<16x1xf32> to vector<16x32xf32>
    %459 = arith.subf %451, %458 : vector<16x32xf32>
    %460 = arith.mulf %459, %459 : vector<16x32xf32>
    %cst_196 = arith.constant dense<0.000000e+00> : vector<16xf32>
    %461 = vector.multi_reduction <add>, %460, %cst_196 [1] : vector<16x32xf32> to vector<16xf32>
    %462 = vector.shape_cast %461 : vector<16xf32> to vector<16x1xf32>
    %cst_197 = arith.constant 3.200000e+01 : f32
    %463 = vector.broadcast %cst_197 : f32 to vector<16x1xf32>
    %464 = arith.divf %462, %463 : vector<16x1xf32>
    %cst_198 = arith.constant 9.99999974E-6 : f32
    %465 = vector.broadcast %cst_198 : f32 to vector<16x1xf32>
    %466 = arith.addf %464, %465 : vector<16x1xf32>
    %467 = math.rsqrt %466 : vector<16x1xf32>
    %468 = vector.broadcast %467 : vector<16x1xf32> to vector<16x32xf32>
    %469 = arith.mulf %459, %468 : vector<16x32xf32>
    %470 = vector.broadcast %452 : vector<1x32xf32> to vector<16x32xf32>
    %471 = arith.mulf %469, %470 : vector<16x32xf32>
    %472 = vector.broadcast %453 : vector<1x32xf32> to vector<16x32xf32>
    %473 = arith.addf %471, %472 : vector<16x32xf32>
    %474 = vector.extract_strided_slice %473 {offsets = [7, 0], sizes = [1, 32], strides = [1, 1]} : vector<16x32xf32> to vector<1x32xf32>
    %475 = vector.extract_strided_slice %473 {offsets = [15, 0], sizes = [1, 32], strides = [1, 1]} : vector<16x32xf32> to vector<1x32xf32>
    %476 = tpu.concatenate %474, %475 in 0 : vector<1x32xf32>, vector<1x32xf32> -> vector<2x32xf32>
    %c0_199 = arith.constant 0 : index
    %c0_200 = arith.constant 0 : index
    %477 = vector.load %arg17[%c0_199, %c0_200] : memref<32x1xf32, #tpu.memory_space<vmem>>, vector<32x1xf32>
    %cst_201 = arith.constant dense<0.000000e+00> : vector<2x1xf32>
    %478 = tpu.matmul %476, %477, %cst_201 {dimension_numbers = #tpu.dot_dimension_numbers<[1], [0], [0], [1], [0, 0, 1, 1], [], []>} : vector<2x32xf32>, vector<32x1xf32>, vector<2x1xf32> -> vector<2x1xf32>
    %c0_202 = arith.constant 0 : index
    %c0_203 = arith.constant 0 : index
    %479 = vector.load %arg18[%c0_202, %c0_203] : memref<1x1xf32, #tpu.memory_space<vmem>>, vector<1x1xf32>
    %480 = vector.broadcast %479 : vector<1x1xf32> to vector<2x1xf32>
    %481 = arith.addf %478, %480 : vector<2x1xf32>
    %c0_204 = arith.constant 0 : index
    %c0_205 = arith.constant 0 : index
    %482 = vector.load %arg19[%c0_204, %c0_205] : memref<2x1xf32, #tpu.memory_space<vmem>>, vector<2x1xf32>
    tpu.vector_store %arg19[%c0_204, %c0_205], %481 {strides = array<i32>} : memref<2x1xf32, #tpu.memory_space<vmem>>, vector<2x1xf32>,
    return
  }
}

</mosaic_0001>

<bundles_post_ra>
// kernel: transformer_forward.1
= control target key start
LH: loop header
LB: loop body
LE: loop exit
PB: predicated region body
PF: predicated region fallthrough
CT: control target
= control target key end

     0   :  { %s5456_s0 = inlined_call_operand.vmem [shape: f32[2,8,16], index: 0, kind: input, shape index: {}]   ;;  %s5457_s1 = inlined_call_operand.vmem [shape: f32[16,32], index: 1, kind: input, shape index: {}]   ;;  %s5458_s2 = inlined_call_operand.vmem [shape: f32[1,32], index: 2, kind: input, shape index: {}]   ;;  %s5459_s3 = inlined_call_operand.vmem [shape: f32[2,32,96], index: 3, kind: input, shape index: {}]   ;;  %s5460_s4 = inlined_call_operand.vmem [shape: f32[2,1,96], index: 4, kind: input, shape index: {}]   ;;  %s5461_s5 = inlined_call_operand.vmem [shape: f32[2,32,32], index: 5, kind: input, shape index: {}]   ;;  %s5462_s6 = inlined_call_operand.vmem [shape: f32[2,1,32], index: 6, kind: input, shape index: {}]   ;;  %s5463_s7 = inlined_call_operand.vmem [shape: f32[2,1,32], index: 7, kind: input, shape index: {}]   ;;  %s5464_s8 = inlined_call_operand.vmem [shape: f32[2,1,32], index: 8, kind: input, shape index: {}]   ;;  %s5465_s9 = inlined_call_operand.vmem [shape: f32[2,32,64], index: 9, kind: input, shape index: {}]   ;;  %s5466_s10 = inlined_call_operand.hbm [shape: f32[2,1,64], index: 10, kind: input, shape index: {}]   ;;  %s5467_s11 = inlined_call_operand.vmem [shape: f32[2,64,32], index: 11, kind: input, shape index: {}]   ;;  %s5468_s12 = inlined_call_operand.hbm [shape: f32[2,1,32], index: 12, kind: input, shape index: {}]   ;;  %s5469_s13 = inlined_call_operand.vmem [shape: f32[2,1,32], index: 13, kind: input, shape index: {}]   ;;  %s5470_s14 = inlined_call_operand.vmem [shape: f32[2,1,32], index: 14, kind: input, shape index: {}]   ;;  %s5471_s15 = inlined_call_operand.hbm [shape: f32[1,32], index: 15, kind: input, shape index: {}]   ;;  %s5472_s16 = inlined_call_operand.hbm [shape: f32[1,32], index: 16, kind: input, shape index: {}]   ;;  %s5473_s17 = inlined_call_operand.vmem [shape: f32[32,1], index: 17, kind: input, shape index: {}]   ;;  %s5474_s18 = inlined_call_operand.<no memory space> [shape: f32[1,1], index: 18, kind: input, shape index: {}]   ;;  %s5475_s19 = inlined_call_operand.vmem [shape: f32[2,1], index: 19, kind: output, shape index: {}]  }
   0x1   :  { %5485 = sst [smem:[#allocation13_spill]] %s5456_s0  ;;  %v24_v0 = vstv %s5474_s18 }
   0x2   :  { %5486 = sst [smem:[#allocation14_spill]] %s5457_s1  ;;  %25 = vst [vmem:[#allocation2] sm:$0x1] %v24_v0 }
   0x3   :  { %5487 = sst [smem:[#allocation15_spill]] %s5458_s2 }
   0x4   :  { %5488 = sst [smem:[#allocation16_spill]] %s5459_s3 }
   0x5   :  { %26 = vsyncpa [#allocation4], 0 }
   0x6   :  { %27 = vsyncpa [#allocation6], 0 }
   0x7   :  { %28 = vsyncpa [#allocation9], 0  ;;  %s4731_s20 = smov [#allocation5]   ;;  %s4732_s1 = smov [#allocation3]  }
   0x8   :  { %s68_s21 = sshll.u32 %s4731_s20, 4  ;;  %s54_s22 = sshll.u32 %s4732_s1, 4  ;;  %s69_s21 = int_to_ptr.vmem [resolvable:$true] %s68_s21  ;;  %s55_s22 = int_to_ptr.vmem [resolvable:$true] %s54_s22 }
   0x9   :  { %s4653_s2 = scalar_lea.vmem %s69_s21, 32  ;;  %p4658_p1 = scmp.lt.s32.totalorder %s69_s21, %s69_s21 }
   0xa   :  { %p4654_p0 = scmp.ne.s32.totalorder %s69_s21, %s4653_s2  ;;  %p4659_p2 = scmp.lt.s32.totalorder %s4653_s2, %s4653_s2 }
   0xc   :  { %p4660_p3 = por %p4659_p2, %p4658_p1 }
   0xe   :  { %p4661_p4 = pnand %p4660_p3, %p4654_p0 }
  0x10   :  { %4664 = shalt.err (!%p4661_p4)
}
  0x11   :  { %s4733_s23 = smov 16   ;;  %s4734_s24 = smov 1  }
  0x12   :  { %74 = dma.hbm_to_vmem [thread:$0]  %s5468_s12, 32, %s69_s21, [#allocation6], %s4733_s23, %s4733_s23, %s4734_s24  }
  0x13   :  { %s4673_s3 = scalar_lea.vmem %s55_s22, 32  ;;  %p4678_p6 = scmp.lt.s32.totalorder %s55_s22, %s55_s22 }
  0x14   :  { %p4674_p5 = scmp.ne.s32.totalorder %s55_s22, %s4673_s3  ;;  %p4679_p7 = scmp.lt.s32.totalorder %s4673_s3, %s4673_s3 }
  0x16   :  { %p4680_p8 = por %p4679_p7, %p4678_p6 }
  0x18   :  { %p4681_p9 = pnand %p4680_p8, %p4674_p5 }
  0x1a   :  { %4684 = shalt.err (!%p4681_p9)
}
  0x1b   :  { %60 = dma.hbm_to_vmem [thread:$0]  %s5466_s10, 32, %s55_s22, [#allocation4], %s4733_s23, %s4733_s23, %s4734_s24  }
  0x1c   :  { %s4735_s28 = smov [#allocation7]   ;;  %s4736_s0 = smov [#allocation8]  }
  0x1d   :  { %s85_s29 = sshll.u32 %s4735_s28, 4  ;;  %s95_s30 = sshll.u32 %s4736_s0, 4  ;;  %s86_s29 = int_to_ptr.vmem [resolvable:$true] %s85_s29  ;;  %s96_s30 = int_to_ptr.vmem [resolvable:$true] %s95_s30 }
  0x1e   :  { %s4693_s12 = scalar_lea.vmem %s86_s29, 16  ;;  %s4697_s20 = scalar_lea.vmem %s86_s29, 32 }
  0x1f   :  { %p4694_p10 = scmp.ne.s32.totalorder %s86_s29, %s4693_s12  ;;  %p4698_p11 = scmp.lt.s32.totalorder %s86_s29, %s86_s29 }
  0x20   :  { %p4699_p12 = scmp.lt.s32.totalorder %s4697_s20, %s4693_s12 }
  0x22   :  { %p4700_p13 = por %p4699_p12, %p4698_p11 }
  0x24   :  { %p4701_p0 = pnand %p4700_p13, %p4694_p10 }
  0x26   :  { %4704 = shalt.err (!%p4701_p0)
}
  0x27   :  { %88 = dma.hbm_to_vmem [thread:$0]  %s5471_s15, 16, %s86_s29, [#allocation6]  }
  0x28   :  { %s4713_s2 = scalar_lea.vmem %s96_s30, 16  ;;  %s4717_s10 = scalar_lea.vmem %s96_s30, 32 }
  0x29   :  { %p4714_p1 = scmp.ne.s32.totalorder %s96_s30, %s4713_s2  ;;  %p4718_p2 = scmp.lt.s32.totalorder %s96_s30, %s96_s30 }
  0x2a   :  { %p4719_p3 = scmp.lt.s32.totalorder %s4717_s10, %s4713_s2 }
  0x2c   :  { %p4720_p4 = por %p4719_p3, %p4718_p2 }
  0x2e   :  { %p4721_p5 = pnand %p4720_p4, %p4714_p1 }
  0x30   :  { %4724 = shalt.err (!%p4721_p5)
}
  0x31   :  { %98 = dma.hbm_to_vmem [thread:$0]  %s5472_s16, 16, %s96_s30, [#allocation9]  }
  0x32   :  { %4725 = dma.done.wait [#allocation4], 32  }
  0x33   :  { %4726 = vsyncadd [#allocation4], 4294967264 }
  0x34   :  { %4727 = dma.done.wait [#allocation6], 48  }
  0x35   :  { %4728 = vsyncadd [#allocation6], 4294967248 }
  0x36   :  { %4729 = dma.done.wait [#allocation9], 16  }
  0x37   :  { %4730 = vsyncadd [#allocation9], 4294967280  ;;  %vm127_vm0 = vcmask 130048   ;;  %s5489_s25 = sld [smem:[#allocation14_spill]]  ;;  %vm220_vm1 = vcmask 261120   ;;  %v4737_v14 = vmov 0.0  }
  0x38   :  { %s5490_s29 = sld [smem:[#allocation13_spill]]  ;;  %vm4738_vm2 = vmmov 0   ;;  %v4019_v16 = vld [vmem:[%s5460_s4] ss:$0 sm:$0xff]  ;;  %s4739_s27 = smov 120   ;;  %vm305_vm3 = vcmask 64512  }
  0x39   :  { %s5491_s30 = sld [smem:[#allocation16_spill]]  ;;  %s4740_s28 = smov 96   ;;  %vm980_vm4 = vcmask 195584   ;;  %vm1908_vm5 = vcmask 523264   ;;  %vm3920_vm6 = vcmask 1040384   ;;  %vm4006_vm7 = vcmask 1024  }
  0x3a   :  { %s4742_s16 = smov 88   ;;  %s4743_s0 = smov 72  }
  0x3b   :  { %s4744_s12 = smov 112   ;;  %s4745_s20 = smov 104  }
  0x3c   :  { %s5483_s21 = smov 56   ;;  %s4747_s1 = smov 64  }
  0x3d   :  { %v119_v1 = vld [vmem:[%s5489_s25 + $0x8] sm:$0xff]  ;;  %v118_v2 = vld [vmem:[%s5489_s25] sm:$0xff]  ;;  %s5492_s25 = sld [smem:[#allocation15_spill]]  ;;  %s5481_s2 = smov 40  }
  0x3e   :  { %v115_v3 = vld [vmem:[%s5490_s29] sm:$0xff]  ;;  %4258 = vmatprep.subr.mxu0 %v119_v1  ;;  %v4015_v5 = vld [vmem:[%s5490_s29 + $0x8] sm:$0xff]  ;;  %s4741_s29 = smov 80   ;;  %s5479_s10 = smov 48  }
  0x3f   :  { %4262 = vmatprep.mubr.msk.f32.mxu0 %vm127_vm0, %v115_v3  ;;  %v212_v4 = vld [vmem:[%s5491_s30 + $0x18] sm:$0xff]  ;;  %4259 = vmatpush3.msra.mxu0 %v119_v1  ;;  %v211_v6 = vld [vmem:[%s5491_s30 + $0x10] sm:$0xff]  ;;  %v210_v7 = vld [vmem:[%s5491_s30 + $0x8] sm:$0xff]  ;;  %s4750_s22 = smov 8   ;;  %s4751_s24 = smov 24  }
  0x40   :  { %4265 = vmatprep.subr.mxu1 %v212_v4  ;;  %4260 = vmatprep.subr.mxu0 %v118_v2  ;;  %v209_v8 = vld [vmem:[%s5491_s30] sm:$0xff] }
  0x41   :  { %4266 = vmatpush3.msra.mxu1 %v212_v4  ;;  %4261 = vmatpush3.msra.mxu0 %v118_v2 }
  0x42   :  { %4263 = vmatmul.mubr.msk.f32.vlgmr.msra.gmra.mxu0 %vm127_vm0, %v4015_v5  ;;  %4267 = vmatprep.subr.mxu1 %v211_v6 }
  0x43   :  { %4268 = vmatpush3.msra.mxu1 %v211_v6  ;;  %v4016_v10 = vld [vmem:[%s5492_s25] ss:$0 sm:$0xff]  ;;  %4276 = vmatprep.subr.mxu0 %v4737_v14 }
  0x44   :  { %4269 = vmatprep.subr.mxu1 %v210_v7  ;;  %4278 = vmatprep.mubr.msk.f32.mxu0 %vm4738_vm2, %v4737_v14 }
  0x45   :  { %4270 = vmatpush3.msra.mxu1 %v210_v7 }
  0x46   :  { %4271 = vmatprep.subr.mxu1 %v209_v8 }
  0x47   :  { %4272 = vmatpush3.msra.mxu1 %v209_v8 }
  0x48   :  { %4286 = vmatprep.subr.mxu1 %v4737_v14 }
 0x102   :  { %v4264_v9 = vpop.f32.mrf.mxu0 }
 0x103   :  { %v4902_v13 = vadd.f32 %v4264_v9, %v4016_v10 }
 0x104   :  { %v200_v11 = vpop.f32.mrf.mxu0 }
 0x105   :  { %v4900_v12 = vadd.f32 %v4016_v10, %v200_v11 }
 0x107   :  { %4273 = vmatprep.mubr.msk.f32.mxu1 %vm220_vm1, %v4900_v12 }
 0x108   :  { %4274 = vmatmul.mubr.msk.f32.vlgmr.msra.gmra.mxu1 %vm220_vm1, %v4902_v13 }
 0x109   :  { %4288 = vmatprep.mubr.msk.f32.mxu1 %vm4738_vm2, %v4737_v14 }
 0x1c8   :  { %v4275_v15 = vpop.f32.mrf.mxu1 }
 0x1c9   :  { %v4931_v19 = vadd.f32 %v4275_v15, %v4019_v16 }
 0x1ca   :  { %v293_v17 = vpop.f32.mrf.mxu1 }
 0x1cb   :  { %v4917_v18 = vadd.f32 %v4019_v16, %v293_v17 }
 0x1cd   :  { %468 = vrot.lane.b32.xlu1 %v4917_v18, %s4739_s27  ;;  %303 = vrot.lane.b32.xlu0 %v4917_v18, %s4740_s28 }
 0x1d1   :  { %636 = vrot.lane.b32.xlu1 %v4917_v18, %s4741_s29  ;;  %470 = vrot.lane.b32.xlu0 %v4917_v18, %s4742_s16 }
 0x1d5   :  { %802 = vrot.lane.b32.xlu1 %v4917_v18, %s4743_s0  ;;  %634 = vrot.lane.b32.xlu0 %v4917_v18, %s4744_s12 }
 0x1d9   :  { %983 = vrot.lane.b32.xlu1 %v4931_v19, %s4740_s28  ;;  %800 = vrot.lane.b32.xlu0 %v4917_v18, %s4745_s20 }
 0x1dd   :  { %1147 = vrot.lane.b32.xlu1 %v4931_v19, %s4739_s27  ;;  %1149 = vrot.lane.b32.xlu0 %v4931_v19, %s4742_s16 }
 0x1e1   :  { %1313 = vrot.lane.b32.xlu1 %v4931_v19, %s4744_s12  ;;  %1315 = vrot.lane.b32.xlu0 %v4931_v19, %s4741_s29 }
 0x1e5   :  { %1479 = vrot.lane.b32.xlu1 %v4931_v19, %s4745_s20  ;;  %1481 = vrot.lane.b32.xlu0 %v4931_v19, %s4743_s0 }
 0x1e9   :  { %558 = vrot.lane.b32.xlu1 %v4917_v18, %s5483_s21  ;;  %392 = vrot.lane.b32.xlu0 %v4917_v18, %s4747_s1 }
 0x23f   :  { %v469_v20 = vpop.permute.xlu1 %468  ;;  %v304_v21 = vpop.permute.xlu0 %303 }
 0x240   :  { %4277 = vmatpush3.xpose.msk.msra.mxu0 %vm305_vm3, %v304_v21 }
 0x241   :  { %4281 = vmatprep.subr.mxu0 %v4737_v14 }
 0x243   :  { %v637_v22 = vpop.permute.xlu1 %636  ;;  %4279 = vmatmul.mubr.msk.f32.vlgmr.msra.gmra.mxu0 %vm305_vm3, %v4917_v18  ;;  %v471_v23 = vpop.permute.xlu0 %470 }
 0x244   :  { %4287 = vmatpush3.xpose.msk.msra.mxu1 %vm305_vm3, %v471_v23  ;;  %4283 = vmatprep.mubr.msk.f32.mxu0 %vm4738_vm2, %v4737_v14 }
 0x245   :  { %4296 = vmatprep.subr.mxu1 %v4737_v14 }
 0x247   :  { %v803_v24 = vpop.permute.xlu1 %802  ;;  %4289 = vmatmul.mubr.msk.f32.vlgmr.msra.gmra.mxu1 %vm305_vm3, %v469_v20  ;;  %v635_v25 = vpop.permute.xlu0 %634 }
 0x248   :  { %4297 = vmatpush3.xpose.msk.msra.mxu1 %vm305_vm3, %v637_v22  ;;  %4298 = vmatprep.mubr.msk.f32.mxu1 %vm4738_vm2, %v4737_v14 }
 0x249   :  { %4306 = vmatprep.subr.mxu1 %v4737_v14 }
 0x24b   :  { %4299 = vmatmul.mubr.msk.f32.vlgmr.msra.gmra.mxu1 %vm305_vm3, %v635_v25  ;;  %v801_v26 = vpop.permute.xlu0 %800  ;;  %v984_v27 = vpop.permute.xlu1 %983 }
 0x24c   :  { %4307 = vmatpush3.xpose.msk.msra.mxu1 %vm305_vm3, %v803_v24  ;;  %4308 = vmatprep.mubr.msk.f32.mxu1 %vm4738_vm2, %v4737_v14 }
 0x24d   :  { %4316 = vmatprep.subr.mxu1 %v4737_v14 }
 0x24f   :  { %4309 = vmatmul.mubr.msk.f32.vlgmr.msra.gmra.mxu1 %vm305_vm3, %v801_v26  ;;  %v1150_v28 = vpop.permute.xlu0 %1149  ;;  %v1148_v29 = vpop.permute.xlu1 %1147 }
 0x250   :  { %4317 = vmatpush3.xpose.msk.msra.mxu1 %vm305_vm3, %v984_v27  ;;  %4318 = vmatprep.mubr.msk.f32.mxu1 %vm4738_vm2, %v4737_v14 }
 0x251   :  { %4326 = vmatprep.subr.mxu1 %v4737_v14 }
 0x253   :  { %4319 = vmatmul.mubr.msk.f32.vlgmr.msra.gmra.mxu1 %vm305_vm3, %v4931_v19  ;;  %v1316_v30 = vpop.permute.xlu0 %1315  ;;  %v1314_v32 = vpop.permute.xlu1 %1313 }
 0x254   :  { %4327 = vmatpush3.xpose.msk.msra.mxu1 %vm305_vm3, %v1150_v28  ;;  %4328 = vmatprep.mubr.msk.f32.mxu1 %vm4738_vm2, %v4737_v14 }
 0x255   :  { %4336 = vmatprep.subr.mxu1 %v4737_v14 }
 0x257   :  { %4329 = vmatmul.mubr.msk.f32.vlgmr.msra.gmra.mxu1 %vm305_vm3, %v1148_v29  ;;  %v1482_v31 = vpop.permute.xlu0 %1481  ;;  %v1480_v34 = vpop.permute.xlu1 %1479 }
 0x258   :  { %4337 = vmatpush3.xpose.msk.msra.mxu1 %vm305_vm3, %v1316_v30  ;;  %4338 = vmatprep.mubr.msk.f32.mxu1 %vm4738_vm2, %v4737_v14 }
 0x259   :  { %4346 = vmatprep.subr.mxu1 %v4737_v14 }
 0x25b   :  { %4339 = vmatmul.mubr.msk.f32.vlgmr.msra.gmra.mxu1 %vm305_vm3, %v1314_v32  ;;  %v393_v33 = vpop.permute.xlu0 %392  ;;  %v5005_v3 = vpop.permute.xlu1 %558 }
 0x25c   :  { %4282 = vmatpush3.msra.mxu0 %v393_v33  ;;  %4347 = vmatpush3.xpose.msk.msra.mxu1 %vm305_vm3, %v1482_v31 }
 0x25d   :  { %4348 = vmatprep.mubr.msk.f32.mxu1 %vm4738_vm2, %v4737_v14  ;;  %4291 = vmatprep.subr.mxu0 %v4737_v14 }
 0x25f   :  { %4349 = vmatmul.mubr.msk.f32.vlgmr.msra.gmra.mxu1 %vm305_vm3, %v1480_v34 }
 0x303   :  { %v376_v35 = vpop.f32.mrf.mxu0 }
 0x304   :  { %v380_v36 = vmul.f32 0.35355338, %v376_v35 }
 0x305   :  { %v4280_v37 = vpop.f32.mrf.mxu0 }
 0x306   :  { %v381_v38 = vsel %vm305_vm3, %v380_v36, -inf }
 0x307   :  { %382 = vmax.xlane.f32.xlu0 %v381_v38  ;;  %v542_v39 = vpop.f32.mrf.mxu1 }
 0x308   :  { %v546_v40 = vmul.f32 0.35355338, %v542_v39 }
 0x309   :  { %v4290_v41 = vpop.f32.mrf.mxu1 }
 0x30a   :  { %v547_v42 = vsel %vm305_vm3, %v546_v40, -inf }
 0x30b   :  { %548 = vmax.xlane.f32.xlu1 %v547_v42  ;;  %v708_v43 = vpop.f32.mrf.mxu1 }
 0x30c   :  { %v712_v44 = vmul.f32 0.35355338, %v708_v43 }
 0x30d   :  { %v4300_v45 = vpop.f32.mrf.mxu1 }
 0x30e   :  { %v713_v46 = vsel %vm305_vm3, %v712_v44, -inf }
 0x30f   :  { %714 = vmax.xlane.f32.xlu0 %v713_v46  ;;  %v874_v47 = vpop.f32.mrf.mxu1 }
 0x310   :  { %v878_v48 = vmul.f32 0.35355338, %v874_v47 }
 0x311   :  { %v4310_v49 = vpop.f32.mrf.mxu1 }
 0x312   :  { %v879_v50 = vsel %vm305_vm3, %v878_v48, -inf }
 0x313   :  { %880 = vmax.xlane.f32.xlu0 %v879_v50  ;;  %v1055_v51 = vpop.f32.mrf.mxu1 }
 0x314   :  { %v1059_v52 = vmul.f32 0.35355338, %v1055_v51 }
 0x315   :  { %v4320_v53 = vpop.f32.mrf.mxu1 }
 0x316   :  { %v1060_v54 = vsel %vm305_vm3, %v1059_v52, -inf }
 0x317   :  { %1061 = vmax.xlane.f32.xlu1 %v1060_v54  ;;  %v1221_v55 = vpop.f32.mrf.mxu1 }
 0x318   :  { %v1225_v56 = vmul.f32 0.35355338, %v1221_v55 }
 0x319   :  { %v4330_v57 = vpop.f32.mrf.mxu1 }
 0x31a   :  { %v1226_v58 = vsel %vm305_vm3, %v1225_v56, -inf }
 0x31b   :  { %1227 = vmax.xlane.f32.xlu0 %v1226_v58  ;;  %v1387_v59 = vpop.f32.mrf.mxu1 }
 0x31c   :  { %v1391_v60 = vmul.f32 0.35355338, %v1387_v59 }
 0x31d   :  { %v4340_v61 = vpop.f32.mrf.mxu1 }
 0x31e   :  { %v1392_v62 = vsel %vm305_vm3, %v1391_v60, -inf }
 0x31f   :  { %1393 = vmax.xlane.f32.xlu1 %v1392_v62  ;;  %v1553_v63 = vpop.f32.mrf.mxu1 }
 0x320   :  { %v1557_v0 = vmul.f32 0.35355338, %v1553_v63 }
 0x321   :  { %v4350_v1 = vpop.f32.mrf.mxu1 }
 0x322   :  { %v1558_v2 = vsel %vm305_vm3, %v1557_v0, -inf }
 0x323   :  { %1559 = vmax.xlane.f32.xlu0 %v1558_v2 }
 0x330   :  { %890 = vrot.lane.b32.xlu1 %v4917_v18, %s5481_s2 }
 0x339   :  { %724 = vrot.lane.b32.xlu0 %v4917_v18, %s5479_s10 }
 0x390   :  { %v383_v4 = vpop.xlane.xlu0 %382 }
 0x391   :  { %v384_v5 = vsub.f32 %v380_v36, %v383_v4 }
 0x393   :  { %v385_v6 = vmul.f32 1.442695, %v384_v5 }
 0x394   :  { %v549_v7 = vpop.xlane.xlu1 %548 }
 0x395   :  { %4561 = vpow2.f32 %v385_v6  ;;  %v550_v8 = vsub.f32 %v546_v40, %v549_v7 }
 0x397   :  { %v551_v9 = vmul.f32 1.442695, %v550_v8 }
 0x398   :  { %v715_v10 = vpop.xlane.xlu0 %714 }
 0x399   :  { %4563 = vpow2.f32 %v551_v9  ;;  %v716_v11 = vsub.f32 %v712_v44, %v715_v10 }
 0x39b   :  { %v717_v15 = vmul.f32 1.442695, %v716_v11 }
 0x39c   :  { %v881_v16 = vpop.xlane.xlu0 %880 }
 0x39d   :  { %4565 = vpow2.f32 %v717_v15  ;;  %v882_v17 = vsub.f32 %v878_v48, %v881_v16 }
 0x39f   :  { %v883_v20 = vmul.f32 1.442695, %v882_v17 }
 0x3a0   :  { %v1062_v28 = vpop.xlane.xlu1 %1061 }
 0x3a1   :  { %4567 = vpow2.f32 %v883_v20  ;;  %v1063_v29 = vsub.f32 %v1059_v52, %v1062_v28  ;;  %v1660_v28 = vld [vmem:[%s5461_s5] sm:$0xff] }
 0x3a2   :  { %v4562_v21 = vpop.eup %4561 }
 0x3a3   :  { %v387_v18 = vsel %vm305_vm3, %v4562_v21, 0.0  ;;  %v1064_v33 = vmul.f32 1.442695, %v1063_v29 }
 0x3a4   :  { %388 = vadd.xlane.f32.xlu1 %v387_v18  ;;  %v1228_v30 = vpop.xlane.xlu0 %1227 }
 0x3a5   :  { %v1229_v32 = vsub.f32 %v1225_v56, %v1228_v30  ;;  %4569 = vpow2.f32 %v1064_v33 }
 0x3a6   :  { %v4564_v22 = vpop.eup %4563 }
 0x3a7   :  { %v553_v23 = vsel %vm305_vm3, %v4564_v22, 0.0  ;;  %v1230_v36 = vmul.f32 1.442695, %v1229_v32 }
 0x3a8   :  { %554 = vadd.xlane.f32.xlu0 %v553_v23  ;;  %v1394_v31 = vpop.xlane.xlu1 %1393 }
 0x3a9   :  { %v1395_v34 = vsub.f32 %v1391_v60, %v1394_v31  ;;  %4571 = vpow2.f32 %v1230_v36 }
 0x3aa   :  { %v4566_v24 = vpop.eup %4565 }
 0x3ab   :  { %v719_v25 = vsel %vm305_vm3, %v4566_v24, 0.0  ;;  %v1396_v37 = vmul.f32 1.442695, %v1395_v34 }
 0x3ac   :  { %720 = vadd.xlane.f32.xlu1 %v719_v25  ;;  %v1560_v35 = vpop.xlane.xlu0 %1559  ;;  %v891_v48 = vpop.permute.xlu1 %890  ;;  %v1663_v25 = vld [vmem:[%s5461_s5 + $0x18] sm:$0xff] }
 0x3ad   :  { %v1561_v38 = vsub.f32 %v1557_v0, %v1560_v35  ;;  %4573 = vpow2.f32 %v1396_v37  ;;  %4356 = vmatprep.subr.mxu1 %v1663_v25 }
 0x3ae   :  { %v5010_v26 = vpop.eup %4567  ;;  %4357 = vmatpush3.msra.mxu1 %v1663_v25 }
 0x3af   :  { %v885_v27 = vsel %vm305_vm3, %v5010_v26, 0.0  ;;  %v1562_v39 = vmul.f32 1.442695, %v1561_v38 }
 0x3b0   :  { %886 = vadd.xlane.f32.xlu0 %v885_v27  ;;  %v725_v49 = vpop.permute.xlu0 %724  ;;  %v1661_v27 = vld [vmem:[%s5461_s5 + $0x8] sm:$0xff] }
 0x3b1   :  { %4575 = vpow2.f32 %v1562_v39 }
 0x3b2   :  { %v4570_v40 = vpop.eup %4569 }
 0x3b3   :  { %v1066_v42 = vsel %vm305_vm3, %v4570_v40, 0.0 }
 0x3b6   :  { %v5018_v41 = vpop.eup %4571 }
 0x3b7   :  { %v1232_v45 = vsel %vm305_vm3, %v5018_v41, 0.0 }
 0x3ba   :  { %v5021_v43 = vpop.eup %4573 }
 0x3bb   :  { %v1398_v44 = vsel %vm305_vm3, %v5021_v43, 0.0 }
 0x3bd   :  { %1237 = vrot.lane.b32.xlu1 %v4931_v19, %s5483_s21 }
 0x3be   :  { %v5027_v46 = vpop.eup %4575 }
 0x3bf   :  { %v1564_v47 = vsel %vm305_vm3, %v5027_v46, 0.0 }
 0x3c6   :  { %1071 = vrot.lane.b32.xlu0 %v4931_v19, %s4747_s1 }
 0x3e1   :  { %1067 = vadd.xlane.f32.xlu1 %v1066_v42 }
 0x3e5   :  { %1399 = vadd.xlane.f32.xlu1 %v1398_v44  ;;  %1233 = vadd.xlane.f32.xlu0 %v1232_v45 }
 0x3e9   :  { %1565 = vadd.xlane.f32.xlu1 %v1564_v47 }
 0x3fa   :  { %1569 = vrot.lane.b32.xlu1 %v4931_v19, %s5481_s2 }
 0x3fb   :  { %1403 = vrot.lane.b32.xlu0 %v4931_v19, %s5479_s10 }
 0x42d   :  { %v389_v50 = vpop.xlane.xlu1 %388 }
 0x42e   :  { %4577 = vrcp.f32 %v389_v50 }
 0x431   :  { %v555_v51 = vpop.xlane.xlu0 %554 }
 0x432   :  { %4579 = vrcp.f32 %v555_v51 }
 0x435   :  { %v721_v52 = vpop.xlane.xlu1 %720 }
 0x436   :  { %4581 = vrcp.f32 %v721_v52 }
 0x439   :  { %v887_v53 = vpop.xlane.xlu0 %886  ;;  %v1238_v62 = vpop.permute.xlu1 %1237 }
 0x43a   :  { %4583 = vrcp.f32 %v887_v53 }
 0x43b   :  { %v4578_v54 = vpop.eup %4577 }
 0x43c   :  { %v391_v55 = vmul.f32 %v4578_v54, %v4562_v21 }
 0x43d   :  { %v1072_v61 = vpop.permute.xlu0 %1071 }
 0x43e   :  { %4284 = vmatmul.mubr.msk.f32.vlgmr.msra.gmra.mxu0 %vm305_vm3, %v391_v55 }
 0x43f   :  { %v4580_v56 = vpop.eup %4579  ;;  %4292 = vmatpush3.msra.mxu0 %v5005_v3  ;;  %4293 = vmatprep.mubr.msk.f32.mxu0 %vm4738_vm2, %v4737_v14 }
 0x440   :  { %4301 = vmatprep.subr.mxu0 %v4737_v14  ;;  %v557_v19 = vmul.f32 %v4580_v56, %v4564_v22 }
 0x442   :  { %4294 = vmatmul.mubr.msk.f32.vlgmr.msra.gmra.mxu0 %vm305_vm3, %v557_v19 }
 0x443   :  { %v4582_v57 = vpop.eup %4581  ;;  %4302 = vmatpush3.msra.mxu0 %v725_v49  ;;  %4303 = vmatprep.mubr.msk.f32.mxu0 %vm4738_vm2, %v4737_v14  ;;  %v4046_v49 = vld [vmem:[%s5462_s6] ss:$0 sm:$0xff] }
 0x444   :  { %4311 = vmatprep.subr.mxu0 %v4737_v14  ;;  %v723_v58 = vmul.f32 %v4582_v57, %v4566_v24 }
 0x446   :  { %4304 = vmatmul.mubr.msk.f32.vlgmr.msra.gmra.mxu0 %vm305_vm3, %v723_v58 }
 0x447   :  { %v4584_v59 = vpop.eup %4583  ;;  %4312 = vmatpush3.msra.mxu0 %v891_v48  ;;  %4313 = vmatprep.mubr.msk.f32.mxu0 %vm4738_vm2, %v4737_v14 }
 0x448   :  { %4321 = vmatprep.subr.mxu0 %v4737_v14  ;;  %v889_v60 = vmul.f32 %v4584_v59, %v5010_v26  ;;  %v1662_v26 = vld [vmem:[%s5461_s5 + $0x10] sm:$0xff] }
 0x449   :  { %4358 = vmatprep.subr.mxu1 %v1662_v26 }
 0x44a   :  { %4314 = vmatmul.mubr.msk.f32.vlgmr.msra.gmra.mxu0 %vm305_vm3, %v889_v60  ;;  %4359 = vmatpush3.msra.mxu1 %v1662_v26 }
 0x44b   :  { %4322 = vmatpush3.msra.mxu0 %v1072_v61  ;;  %4323 = vmatprep.mubr.msk.f32.mxu0 %vm4738_vm2, %v4737_v14 }
 0x44c   :  { %4331 = vmatprep.subr.mxu0 %v4737_v14  ;;  %4360 = vmatprep.subr.mxu1 %v1661_v27 }
 0x44d   :  { %4361 = vmatpush3.msra.mxu1 %v1661_v27 }
 0x44e   :  { %4362 = vmatprep.subr.mxu1 %v1660_v28 }
 0x44f   :  { %4363 = vmatpush3.msra.mxu1 %v1660_v28 }
 0x46a   :  { %v1068_v63 = vpop.xlane.xlu1 %1067 }
 0x46b   :  { %4585 = vrcp.f32 %v1068_v63 }
 0x46e   :  { %v1400_v0 = vpop.xlane.xlu1 %1399  ;;  %v1234_v1 = vpop.xlane.xlu0 %1233 }
 0x46f   :  { %4587 = vrcp.f32 %v1234_v1 }
 0x470   :  { %4589 = vrcp.f32 %v1400_v0 }
 0x472   :  { %v1566_v2 = vpop.xlane.xlu1 %1565  ;;  %v1404_v8 = vpop.permute.xlu0 %1403 }
 0x473   :  { %4591 = vrcp.f32 %v1566_v2  ;;  %v1801_v2 = vld [vmem:[%s5465_s9 + $0x10] sm:$0xff] }
 0x476   :  { %v1570_v11 = vpop.permute.xlu1 %1569 }
 0x478   :  { %v4586_v3 = vpop.eup %4585 }
 0x479   :  { %v1070_v4 = vmul.f32 %v4586_v3, %v4570_v40  ;;  %v1800_v3 = vld [vmem:[%s5465_s9 + $0x8] sm:$0xff] }
 0x47b   :  { %4324 = vmatmul.mubr.msk.f32.vlgmr.msra.gmra.mxu0 %vm305_vm3, %v1070_v4  ;;  %v1799_v4 = vld [vmem:[%s5465_s9] sm:$0xff] }
 0x47c   :  { %4332 = vmatpush3.msra.mxu0 %v1238_v62  ;;  %4333 = vmatprep.mubr.msk.f32.mxu0 %vm4738_vm2, %v4737_v14  ;;  %v4588_v5 = vpop.eup %4587 }
 0x47d   :  { %4341 = vmatprep.subr.mxu0 %v4737_v14  ;;  %v1236_v6 = vmul.f32 %v4588_v5, %v5018_v41  ;;  %v4590_v7 = vpop.eup %4589  ;;  %v1900_v5 = vld [vmem:[%s5467_s11 + $0x38] sm:$0xff] }
 0x47e   :  { %v1402_v9 = vmul.f32 %v4590_v7, %v5021_v43  ;;  %4378 = vmatprep.subr.mxu1 %v1900_v5  ;;  %v1898_v7 = vld [vmem:[%s5467_s11 + $0x28] sm:$0xff] }
 0x47f   :  { %4334 = vmatmul.mubr.msk.f32.vlgmr.msra.gmra.mxu0 %vm305_vm3, %v1236_v6  ;;  %v1899_v6 = vld [vmem:[%s5467_s11 + $0x30] sm:$0xff] }
 0x480   :  { %4342 = vmatpush3.msra.mxu0 %v1404_v8  ;;  %4343 = vmatprep.mubr.msk.f32.mxu0 %vm4738_vm2, %v4737_v14  ;;  %v4592_v10 = vpop.eup %4591  ;;  %v1897_v8 = vld [vmem:[%s5467_s11 + $0x20] sm:$0xff] }
 0x481   :  { %4351 = vmatprep.subr.mxu0 %v4737_v14  ;;  %v1568_v15 = vmul.f32 %v4592_v10, %v5027_v46 }
 0x483   :  { %4344 = vmatmul.mubr.msk.f32.vlgmr.msra.gmra.mxu0 %vm305_vm3, %v1402_v9 }
 0x484   :  { %4352 = vmatpush3.msra.mxu0 %v1570_v11  ;;  %4353 = vmatprep.mubr.msk.f32.mxu0 %vm4738_vm2, %v4737_v14 }
 0x487   :  { %4354 = vmatmul.mubr.msk.f32.vlgmr.msra.gmra.mxu0 %vm305_vm3, %v1568_v15 }
 0x4fe   :  { %v464_v16 = vpop.f32.mrf.mxu0 }
 0x500   :  { %v4285_v17 = vpop.f32.mrf.mxu0 }
 0x502   :  { %v630_v20 = vpop.f32.mrf.mxu0 }
 0x503   :  { %967 = vrot.lane.b32.xlu0 %v630_v20, %s4750_s22 }
 0x504   :  { %v4295_v21 = vpop.f32.mrf.mxu0 }
 0x505   :  { %v4049_v21 = vld [vmem:[%s5463_s7] ss:$0 sm:$0xff] }
 0x506   :  { %v796_v18 = vpop.f32.mrf.mxu0 }
 0x507   :  { %971 = vrot.lane.b32.xlu1 %v796_v18, %s4733_s23 }
 0x508   :  { %v4305_v22 = vpop.f32.mrf.mxu0 }
 0x509   :  { %v4050_v22 = vld [vmem:[%s5464_s8] ss:$0 sm:$0xff] }
 0x50a   :  { %v962_v23 = vpop.f32.mrf.mxu0 }
 0x50b   :  { %975 = vrot.lane.b32.xlu1 %v962_v23, %s4751_s24 }
 0x50c   :  { %v4315_v24 = vpop.f32.mrf.mxu0 }
 0x53b   :  { %v1143_v29 = vpop.f32.mrf.mxu0 }
 0x53d   :  { %v4325_v30 = vpop.f32.mrf.mxu0 }
 0x53e   :  { %v1895_v30 = vld [vmem:[%s5467_s11 + $0x10] sm:$0xff] }
 0x53f   :  { %v1309_v31 = vpop.f32.mrf.mxu0 }
 0x540   :  { %1646 = vrot.lane.b32.xlu0 %v1309_v31, %s4750_s22  ;;  %v1894_v31 = vld [vmem:[%s5467_s11 + $0x8] sm:$0xff] }
 0x541   :  { %v4335_v32 = vpop.f32.mrf.mxu0 }
 0x542   :  { %v1893_v32 = vld [vmem:[%s5467_s11] sm:$0xff] }
 0x543   :  { %v1475_v33 = vpop.f32.mrf.mxu0 }
 0x544   :  { %1650 = vrot.lane.b32.xlu0 %v1475_v33, %s4733_s23  ;;  %v4051_v33 = vld [vmem:[#allocation3] ss:$0 sm:$0xff] }
 0x545   :  { %v4345_v34 = vpop.f32.mrf.mxu0 }
 0x547   :  { %v1641_v35 = vpop.f32.mrf.mxu0 }
 0x548   :  { %1654 = vrot.lane.b32.xlu1 %v1641_v35, %s4751_s24 }
 0x549   :  { %v4355_v36 = vpop.f32.mrf.mxu0 }
 0x575   :  { %v968_v37 = vpop.permute.xlu0 %967 }
 0x576   :  { %v978_v39 = vsel %vm305_vm3, %v464_v16, %v968_v37 }
 0x579   :  { %v972_v38 = vpop.permute.xlu1 %971 }
 0x57a   :  { %v979_v40 = vsel %vm127_vm0, %v978_v39, %v972_v38 }
 0x57d   :  { %v976_v41 = vpop.permute.xlu1 %975 }
 0x57e   :  { %v981_v42 = vsel %vm980_vm4, %v979_v40, %v976_v41  ;;  %v4054_v40 = vld [vmem:[#allocation5] ss:$0 sm:$0xff] }
 0x57f   :  { %4364 = vmatprep.mubr.msk.f32.mxu1 %vm220_vm1, %v981_v42 }
 0x5b2   :  { %v1647_v43 = vpop.permute.xlu0 %1646 }
 0x5b3   :  { %v1657_v45 = vsel %vm305_vm3, %v1143_v29, %v1647_v43  ;;  %v1896_v29 = vld [vmem:[%s5467_s11 + $0x18] sm:$0xff] }
 0x5b6   :  { %v1651_v44 = vpop.permute.xlu0 %1650 }
 0x5b7   :  { %v1658_v46 = vsel %vm127_vm0, %v1657_v45, %v1651_v44 }
 0x5ba   :  { %v1655_v47 = vpop.permute.xlu1 %1654 }
 0x5bb   :  { %v1659_v48 = vsel %vm980_vm4, %v1658_v46, %v1655_v47 }
 0x5bc   :  { %4365 = vmatmul.mubr.msk.f32.vlgmr.msra.gmra.mxu1 %vm220_vm1, %v1659_v48 }
 0x5bd   :  { %4379 = vmatpush3.msra.mxu1 %v1900_v5 }
 0x5be   :  { %4380 = vmatprep.subr.mxu1 %v1899_v6 }
 0x5bf   :  { %4381 = vmatpush3.msra.mxu1 %v1899_v6 }
 0x5c0   :  { %4382 = vmatprep.subr.mxu1 %v1898_v7 }
 0x5c1   :  { %4383 = vmatpush3.msra.mxu1 %v1898_v7 }
 0x5c2   :  { %4384 = vmatprep.subr.mxu1 %v1897_v8 }
 0x5c3   :  { %4385 = vmatpush3.msra.mxu1 %v1897_v8  ;;  %v4058_v8 = vld [vmem:[%s5470_s14] ss:$0 sm:$0xff] }
 0x5c4   :  { %4386 = vmatprep.subr.mxu1 %v1896_v29 }
 0x5c5   :  { %4387 = vmatpush3.msra.mxu1 %v1896_v29 }
 0x5c6   :  { %4388 = vmatprep.subr.mxu1 %v1895_v30 }
 0x5c7   :  { %4389 = vmatpush3.msra.mxu1 %v1895_v30 }
 0x5c8   :  { %4390 = vmatprep.subr.mxu1 %v1894_v31 }
 0x5c9   :  { %4391 = vmatpush3.msra.mxu1 %v1894_v31 }
 0x5ca   :  { %4392 = vmatprep.subr.mxu1 %v1893_v32 }
 0x5cb   :  { %4393 = vmatpush3.msra.mxu1 %v1893_v32 }
 0x5cc   :  { %4418 = vmatprep.subr.mxu1 %v4737_v14 }
 0x67c   :  { %v4366_v50 = vpop.f32.mrf.mxu1 }
 0x67d   :  { %v1749_v51 = vadd.f32 %v4366_v50, %v4046_v49 }
 0x67e   :  { %v1743_v52 = vpop.f32.mrf.mxu1 }
 0x67f   :  { %v1744_v53 = vadd.f32 %v4046_v49, %v1743_v52  ;;  %v1753_v54 = vadd.f32 %v1749_v51, %v4902_v13 }
 0x681   :  { %v1759_v55 = vsel %vm220_vm1, %v1753_v54, 0.0  ;;  %v1752_v56 = vadd.f32 %v1744_v53, %v4900_v12  ;;  %v1802_v12 = vld [vmem:[%s5465_s9 + $0x18] sm:$0xff] }
 0x682   :  { %1760 = vadd.xlane.f32.xlu1 %v1759_v55  ;;  %4367 = vmatprep.subr.mxu0 %v1802_v12 }
 0x683   :  { %v1756_v19 = vsel %vm220_vm1, %v1752_v56, 0.0  ;;  %4368 = vmatpush3.msra.mxu0 %v1802_v12 }
 0x684   :  { %1757 = vadd.xlane.f32.xlu0 %v1756_v19  ;;  %4369 = vmatprep.subr.mxu0 %v1801_v2 }
 0x685   :  { %4370 = vmatpush3.msra.mxu0 %v1801_v2 }
 0x686   :  { %4371 = vmatprep.subr.mxu0 %v1800_v3 }
 0x687   :  { %4372 = vmatpush3.msra.mxu0 %v1800_v3  ;;  %v4057_v3 = vld [vmem:[%s5469_s13] ss:$0 sm:$0xff] }
 0x688   :  { %4373 = vmatprep.subr.mxu0 %v1799_v4 }
 0x689   :  { %4374 = vmatpush3.msra.mxu0 %v1799_v4 }
 0x70b   :  { %v1761_v57 = vpop.xlane.xlu1 %1760 }
 0x70c   :  { %v1764_v58 = vmul.f32 0.03125, %v1761_v57 }
 0x70d   :  { %v1758_v59 = vpop.xlane.xlu0 %1757 }
 0x70e   :  { %v1763_v60 = vmul.f32 0.03125, %v1758_v59  ;;  %v1766_v61 = vsub.f32 %v1753_v54, %v1764_v58  ;;  %v4062_v58 = vld [vmem:[%s5491_s30 + $0x38] sm:$0xff]  ;;  %v4061_v59 = vld [vmem:[%s5491_s30 + $0x30] sm:$0xff] }
 0x70f   :  { %4397 = vmatprep.subr.mxu0 %v4062_v58 }
 0x710   :  { %v1765_v62 = vsub.f32 %v1752_v56, %v1763_v60  ;;  %v1768_v1 = vmul.f32 %v1766_v61, %v1766_v61  ;;  %v4060_v60 = vld [vmem:[%s5491_s30 + $0x28] sm:$0xff] }
 0x712   :  { %v1767_v63 = vmul.f32 %v1765_v62, %v1765_v62  ;;  %v1772_v13 = vsel %vm220_vm1, %v1768_v1, 0.0 }
 0x714   :  { %v1769_v0 = vsel %vm220_vm1, %v1767_v63, 0.0 }
 0x715   :  { %1770 = vadd.xlane.f32.xlu0 %v1769_v0 }
 0x719   :  { %1773 = vadd.xlane.f32.xlu0 %v1772_v13 }
 0x79e   :  { %v1771_v9 = vpop.xlane.xlu0 %1770 }
 0x79f   :  { %v1775_v10 = vmul.f32 0.03125, %v1771_v9 }
 0x7a1   :  { %v1777_v11 = vadd.f32 1e-05, %v1775_v10 }
 0x7a2   :  { %v1774_v15 = vpop.xlane.xlu0 %1773 }
 0x7a3   :  { %4593 = vrsqrt.f32 %v1777_v11  ;;  %v1776_v16 = vmul.f32 0.03125, %v1774_v15 }
 0x7a5   :  { %v1778_v17 = vadd.f32 1e-05, %v1776_v16  ;;  %v4064_v16 = vld [vmem:[%s5460_s4 + $0x1] ss:$0 sm:$0xff]  ;;  %s5493_s4 = smov 56  }
 0x7a7   :  { %4595 = vrsqrt.f32 %v1778_v17 }
 0x7b0   :  { %v4594_v20 = vpop.eup %4593 }
 0x7b1   :  { %v1781_v18 = vmul.f32 %v4594_v20, %v1765_v62 }
 0x7b3   :  { %v1789_v23 = vmul.f32 %v4049_v21, %v1781_v18 }
 0x7b4   :  { %v4596_v24 = vpop.eup %4595 }
 0x7b5   :  { %v1782_v25 = vmul.f32 %v4596_v24, %v1766_v61  ;;  %v1797_v26 = vadd.f32 %v4050_v22, %v1789_v23  ;;  %v4059_v61 = vld [vmem:[%s5491_s30 + $0x20] sm:$0xff] }
 0x7b7   :  { %v1790_v27 = vmul.f32 %v4049_v21, %v1782_v25  ;;  %4375 = vmatprep.mubr.msk.f32.mxu0 %vm220_vm1, %v1797_v26 }
 0x7b9   :  { %v1798_v28 = vadd.f32 %v4050_v22, %v1790_v27 }
 0x7bb   :  { %4376 = vmatmul.mubr.msk.f32.vlgmr.msra.gmra.mxu0 %vm220_vm1, %v1798_v28 }
 0x7bc   :  { %4398 = vmatpush3.msra.mxu0 %v4062_v58 }
 0x7bd   :  { %4399 = vmatprep.subr.mxu0 %v4061_v59 }
 0x7be   :  { %4400 = vmatpush3.msra.mxu0 %v4061_v59 }
 0x7bf   :  { %4401 = vmatprep.subr.mxu0 %v4060_v60 }
 0x7c0   :  { %4402 = vmatpush3.msra.mxu0 %v4060_v60 }
 0x7c1   :  { %4403 = vmatprep.subr.mxu0 %v4059_v61 }
 0x7c2   :  { %4404 = vmatpush3.msra.mxu0 %v4059_v61 }
 0x7c3   :  { %4408 = vmatprep.subr.mxu0 %v4737_v14 }
 0x87b   :  { %v4377_v34 = vpop.f32.mrf.mxu0 }
 0x87c   :  { %v1888_v35 = vadd.f32 %v4377_v34, %v4051_v33 }
 0x87d   :  { %v1882_v36 = vpop.f32.mrf.mxu0 }
 0x87e   :  { %v1883_v37 = vadd.f32 %v4051_v33, %v1882_v36  ;;  %v1892_v39 = vmax.f32 %v1888_v35, 0.0 }
 0x880   :  { %v1891_v38 = vmax.f32 %v1883_v37, 0.0 }
 0x882   :  { %4394 = vmatprep.mubr.msk.f32.mxu1 %vm1908_vm5, %v1891_v38 }
 0x883   :  { %4395 = vmatmul.mubr.msk.f32.vlgmr.msra.gmra.mxu1 %vm1908_vm5, %v1892_v39 }
 0x884   :  { %4420 = vmatprep.mubr.msk.f32.mxu1 %vm4738_vm2, %v4737_v14 }
 0x943   :  { %v4396_v41 = vpop.f32.mrf.mxu1 }
 0x944   :  { %v1987_v42 = vadd.f32 %v4396_v41, %v4054_v40 }
 0x945   :  { %v1981_v43 = vpop.f32.mrf.mxu1 }
 0x946   :  { %v1982_v44 = vadd.f32 %v4054_v40, %v1981_v43  ;;  %v1991_v45 = vadd.f32 %v1987_v42, %v1798_v28 }
 0x948   :  { %v1997_v46 = vsel %vm220_vm1, %v1991_v45, 0.0  ;;  %v1990_v47 = vadd.f32 %v1982_v44, %v1797_v26 }
 0x949   :  { %1998 = vadd.xlane.f32.xlu0 %v1997_v46 }
 0x94a   :  { %v1994_v48 = vsel %vm220_vm1, %v1990_v47, 0.0 }
 0x94b   :  { %1995 = vadd.xlane.f32.xlu1 %v1994_v48 }
 0x9d2   :  { %v1999_v49 = vpop.xlane.xlu0 %1998 }
 0x9d3   :  { %v2001_v50 = vmul.f32 0.03125, %v1999_v49 }
 0x9d4   :  { %v1996_v51 = vpop.xlane.xlu1 %1995 }
 0x9d5   :  { %v2003_v52 = vsub.f32 %v1991_v45, %v2001_v50  ;;  %v2000_v53 = vmul.f32 0.03125, %v1996_v51 }
 0x9d7   :  { %v2002_v54 = vsub.f32 %v1990_v47, %v2000_v53  ;;  %v2005_v55 = vmul.f32 %v2003_v52, %v2003_v52 }
 0x9d9   :  { %v2009_v56 = vsel %vm220_vm1, %v2005_v55, 0.0  ;;  %v2004_v19 = vmul.f32 %v2002_v54, %v2002_v54 }
 0x9da   :  { %2010 = vadd.xlane.f32.xlu0 %v2009_v56 }
 0x9db   :  { %v2006_v57 = vsel %vm220_vm1, %v2004_v19, 0.0 }
 0x9dc   :  { %2007 = vadd.xlane.f32.xlu1 %v2006_v57 }
 0xa63   :  { %v2011_v62 = vpop.xlane.xlu0 %2010 }
 0xa64   :  { %v2013_v63 = vmul.f32 0.03125, %v2011_v62 }
 0xa65   :  { %v2008_v0 = vpop.xlane.xlu1 %2007 }
 0xa66   :  { %v2015_v1 = vadd.f32 1e-05, %v2013_v63  ;;  %v2012_v13 = vmul.f32 0.03125, %v2008_v0 }
 0xa68   :  { %4597 = vrsqrt.f32 %v2015_v1  ;;  %v2014_v12 = vadd.f32 1e-05, %v2012_v13 }
 0xa6a   :  { %4599 = vrsqrt.f32 %v2014_v12 }
 0xa75   :  { %v4598_v2 = vpop.eup %4597 }
 0xa76   :  { %v2019_v4 = vmul.f32 %v4598_v2, %v2003_v52 }
 0xa77   :  { %v4600_v5 = vpop.eup %4599 }
 0xa78   :  { %v2018_v6 = vmul.f32 %v4600_v5, %v2002_v54  ;;  %v2027_v7 = vmul.f32 %v4057_v3, %v2019_v4 }
 0xa7a   :  { %v2026_v9 = vmul.f32 %v4057_v3, %v2018_v6  ;;  %v5177_v11 = vadd.f32 %v4058_v8, %v2027_v7 }
 0xa7c   :  { %v5175_v10 = vadd.f32 %v4058_v8, %v2026_v9 }
 0xa7e   :  { %4405 = vmatprep.mubr.msk.f32.mxu0 %vm220_vm1, %v5175_v10 }
 0xa7f   :  { %4406 = vmatmul.mubr.msk.f32.vlgmr.msra.gmra.mxu0 %vm220_vm1, %v5177_v11 }
 0xa80   :  { %4410 = vmatprep.mubr.msk.f32.mxu0 %vm4738_vm2, %v4737_v14 }
 0xb3f   :  { %v4407_v15 = vpop.f32.mrf.mxu0 }
 0xb40   :  { %v5202_v21 = vadd.f32 %v4407_v15, %v4064_v16 }
 0xb41   :  { %v2121_v17 = vpop.f32.mrf.mxu0 }
 0xb42   :  { %v5188_v20 = vadd.f32 %v4064_v16, %v2121_v17 }
 0xb44   :  { %2297 = vrot.lane.b32.xlu0 %v5188_v20, %s4742_s16  ;;  %2131 = vrot.lane.b32.xlu1 %v5188_v20, %s4740_s28 }
 0xb48   :  { %2461 = vrot.lane.b32.xlu0 %v5188_v20, %s4744_s12  ;;  %2295 = vrot.lane.b32.xlu1 %v5188_v20, %s4739_s27 }
 0xb4c   :  { %2627 = vrot.lane.b32.xlu0 %v5188_v20, %s4745_s20  ;;  %2463 = vrot.lane.b32.xlu1 %v5188_v20, %s4741_s29 }
 0xb50   :  { %2975 = vrot.lane.b32.xlu0 %v5202_v21, %s4742_s16  ;;  %2629 = vrot.lane.b32.xlu1 %v5188_v20, %s4743_s0 }
 0xb54   :  { %3141 = vrot.lane.b32.xlu0 %v5202_v21, %s4741_s29  ;;  %2809 = vrot.lane.b32.xlu1 %v5202_v21, %s4740_s28  ;;  %s5495_s28 = smov 48  }
 0xb58   :  { %3307 = vrot.lane.b32.xlu0 %v5202_v21, %s4743_s0  ;;  %2973 = vrot.lane.b32.xlu1 %v5202_v21, %s4739_s27  ;;  %s5494_s27 = smov 40  }
 0xb5c   :  { %2219 = vrot.lane.b32.xlu0 %v5188_v20, %s4747_s1  ;;  %3139 = vrot.lane.b32.xlu1 %v5202_v21, %s4744_s12 }
 0xb60   :  { %3305 = vrot.lane.b32.xlu1 %v5202_v21, %s4745_s20 }
 0xb64   :  { %2385 = vrot.lane.b32.xlu1 %v5188_v20, %s5493_s4 }
 0xbb6   :  { %v2298_v18 = vpop.permute.xlu0 %2297  ;;  %v2132_v22 = vpop.permute.xlu1 %2131 }
 0xbb7   :  { %4409 = vmatpush3.xpose.msk.msra.mxu0 %vm305_vm3, %v2132_v22  ;;  %4419 = vmatpush3.xpose.msk.msra.mxu1 %vm305_vm3, %v2298_v18 }
 0xbb8   :  { %4428 = vmatprep.subr.mxu1 %v4737_v14  ;;  %4413 = vmatprep.subr.mxu0 %v4737_v14 }
 0xbba   :  { %v2462_v23 = vpop.permute.xlu0 %2461  ;;  %4411 = vmatmul.mubr.msk.f32.vlgmr.msra.gmra.mxu0 %vm305_vm3, %v5188_v20  ;;  %v2296_v24 = vpop.permute.xlu1 %2295 }
 0xbbb   :  { %4421 = vmatmul.mubr.msk.f32.vlgmr.msra.gmra.mxu1 %vm305_vm3, %v2296_v24  ;;  %4415 = vmatprep.mubr.msk.f32.mxu0 %vm4738_vm2, %v4737_v14 }
 0xbbc   :  { %4430 = vmatprep.mubr.msk.f32.mxu1 %vm4738_vm2, %v4737_v14 }
 0xbbe   :  { %v2628_v25 = vpop.permute.xlu0 %2627  ;;  %v2464_v26 = vpop.permute.xlu1 %2463 }
 0xbbf   :  { %4429 = vmatpush3.xpose.msk.msra.mxu1 %vm305_vm3, %v2464_v26 }
 0xbc0   :  { %4438 = vmatprep.subr.mxu1 %v4737_v14 }
 0xbc2   :  { %v2976_v27 = vpop.permute.xlu0 %2975  ;;  %4431 = vmatmul.mubr.msk.f32.vlgmr.msra.gmra.mxu1 %vm305_vm3, %v2462_v23  ;;  %v2630_v28 = vpop.permute.xlu1 %2629 }
 0xbc3   :  { %4439 = vmatpush3.xpose.msk.msra.mxu1 %vm305_vm3, %v2630_v28  ;;  %4440 = vmatprep.mubr.msk.f32.mxu1 %vm4738_vm2, %v4737_v14 }
 0xbc4   :  { %4448 = vmatprep.subr.mxu1 %v4737_v14 }
 0xbc6   :  { %v3142_v29 = vpop.permute.xlu0 %3141  ;;  %4441 = vmatmul.mubr.msk.f32.vlgmr.msra.gmra.mxu1 %vm305_vm3, %v2628_v25  ;;  %v2810_v30 = vpop.permute.xlu1 %2809 }
 0xbc7   :  { %4449 = vmatpush3.xpose.msk.msra.mxu1 %vm305_vm3, %v2810_v30  ;;  %4450 = vmatprep.mubr.msk.f32.mxu1 %vm4738_vm2, %v4737_v14 }
 0xbc8   :  { %4458 = vmatprep.subr.mxu1 %v4737_v14 }
 0xbca   :  { %v3308_v31 = vpop.permute.xlu0 %3307  ;;  %4451 = vmatmul.mubr.msk.f32.vlgmr.msra.gmra.mxu1 %vm305_vm3, %v5202_v21  ;;  %v2974_v32 = vpop.permute.xlu1 %2973 }
 0xbcb   :  { %4459 = vmatpush3.xpose.msk.msra.mxu1 %vm305_vm3, %v2976_v27  ;;  %4460 = vmatprep.mubr.msk.f32.mxu1 %vm4738_vm2, %v4737_v14 }
 0xbcc   :  { %4468 = vmatprep.subr.mxu1 %v4737_v14 }
 0xbce   :  { %v2220_v33 = vpop.permute.xlu0 %2219  ;;  %4461 = vmatmul.mubr.msk.f32.vlgmr.msra.gmra.mxu1 %vm305_vm3, %v2974_v32  ;;  %v3140_v34 = vpop.permute.xlu1 %3139 }
 0xbcf   :  { %4414 = vmatpush3.msra.mxu0 %v2220_v33  ;;  %4469 = vmatpush3.xpose.msk.msra.mxu1 %vm305_vm3, %v3142_v29 }
 0xbd0   :  { %4470 = vmatprep.mubr.msk.f32.mxu1 %vm4738_vm2, %v4737_v14  ;;  %4478 = vmatprep.subr.mxu1 %v4737_v14 }
 0xbd1   :  { %4423 = vmatprep.subr.mxu0 %v4737_v14 }
 0xbd2   :  { %4471 = vmatmul.mubr.msk.f32.vlgmr.msra.gmra.mxu1 %vm305_vm3, %v3140_v34  ;;  %v3306_v35 = vpop.permute.xlu1 %3305 }
 0xbd3   :  { %4479 = vmatpush3.xpose.msk.msra.mxu1 %vm305_vm3, %v3308_v31  ;;  %4480 = vmatprep.mubr.msk.f32.mxu1 %vm4738_vm2, %v4737_v14 }
 0xbd6   :  { %4481 = vmatmul.mubr.msk.f32.vlgmr.msra.gmra.mxu1 %vm305_vm3, %v3306_v35  ;;  %v5276_v12 = vpop.permute.xlu1 %2385 }
 0xc7a   :  { %v2203_v36 = vpop.f32.mrf.mxu0 }
 0xc7b   :  { %v2207_v37 = vmul.f32 0.35355338, %v2203_v36  ;;  %v2369_v38 = vpop.f32.mrf.mxu1 }
 0xc7c   :  { %v2373_v39 = vmul.f32 0.35355338, %v2369_v38  ;;  %v4412_v40 = vpop.f32.mrf.mxu0 }
 0xc7d   :  { %v4422_v41 = vpop.f32.mrf.mxu1  ;;  %v2208_v42 = vsel %vm305_vm3, %v2207_v37, -inf }
 0xc7e   :  { %2209 = vmax.xlane.f32.xlu0 %v2208_v42  ;;  %v2374_v43 = vsel %vm305_vm3, %v2373_v39, -inf }
 0xc7f   :  { %2375 = vmax.xlane.f32.xlu1 %v2374_v43 }
 0xc82   :  { %v2535_v44 = vpop.f32.mrf.mxu1 }
 0xc83   :  { %v2539_v45 = vmul.f32 0.35355338, %v2535_v44 }
 0xc84   :  { %v4432_v46 = vpop.f32.mrf.mxu1 }
 0xc85   :  { %v2540_v47 = vsel %vm305_vm3, %v2539_v45, -inf }
 0xc86   :  { %2541 = vmax.xlane.f32.xlu0 %v2540_v47  ;;  %v2701_v48 = vpop.f32.mrf.mxu1 }
 0xc87   :  { %v2705_v49 = vmul.f32 0.35355338, %v2701_v48 }
 0xc88   :  { %v4442_v50 = vpop.f32.mrf.mxu1 }
 0xc89   :  { %v2706_v51 = vsel %vm305_vm3, %v2705_v49, -inf }
 0xc8a   :  { %2707 = vmax.xlane.f32.xlu0 %v2706_v51  ;;  %v2881_v52 = vpop.f32.mrf.mxu1 }
 0xc8b   :  { %v2885_v53 = vmul.f32 0.35355338, %v2881_v52 }
 0xc8c   :  { %v4452_v54 = vpop.f32.mrf.mxu1 }
 0xc8d   :  { %v2886_v55 = vsel %vm305_vm3, %v2885_v53, -inf }
 0xc8e   :  { %2887 = vmax.xlane.f32.xlu1 %v2886_v55  ;;  %v3047_v56 = vpop.f32.mrf.mxu1 }
 0xc8f   :  { %v3051_v19 = vmul.f32 0.35355338, %v3047_v56 }
 0xc90   :  { %v4462_v57 = vpop.f32.mrf.mxu1 }
 0xc91   :  { %v3052_v58 = vsel %vm305_vm3, %v3051_v19, -inf }
 0xc92   :  { %3053 = vmax.xlane.f32.xlu0 %v3052_v58  ;;  %v3213_v59 = vpop.f32.mrf.mxu1 }
 0xc93   :  { %v3217_v60 = vmul.f32 0.35355338, %v3213_v59 }
 0xc94   :  { %v4472_v61 = vpop.f32.mrf.mxu1 }
 0xc95   :  { %v3218_v62 = vsel %vm305_vm3, %v3217_v60, -inf }
 0xc96   :  { %3219 = vmax.xlane.f32.xlu1 %v3218_v62  ;;  %v3379_v63 = vpop.f32.mrf.mxu1 }
 0xc97   :  { %v3383_v0 = vmul.f32 0.35355338, %v3379_v63 }
 0xc98   :  { %v4482_v1 = vpop.f32.mrf.mxu1 }
 0xc99   :  { %v3384_v13 = vsel %vm305_vm3, %v3383_v0, -inf }
 0xc9a   :  { %3385 = vmax.xlane.f32.xlu0 %v3384_v13 }
 0xca7   :  { %2717 = vrot.lane.b32.xlu1 %v5188_v20, %s5494_s27 }
 0xcb0   :  { %2551 = vrot.lane.b32.xlu0 %v5188_v20, %s5495_s28 }
 0xd07   :  { %v2210_v2 = vpop.xlane.xlu0 %2209 }
 0xd08   :  { %v2211_v3 = vsub.f32 %v2207_v37, %v2210_v2  ;;  %v2376_v4 = vpop.xlane.xlu1 %2375 }
 0xd09   :  { %v2377_v5 = vsub.f32 %v2373_v39, %v2376_v4 }
 0xd0a   :  { %v2212_v6 = vmul.f32 1.442695, %v2211_v3 }
 0xd0b   :  { %v2378_v7 = vmul.f32 1.442695, %v2377_v5 }
 0xd0c   :  { %4601 = vpow2.f32 %v2212_v6 }
 0xd0d   :  { %4603 = vpow2.f32 %v2378_v7 }
 0xd0f   :  { %v2542_v8 = vpop.xlane.xlu0 %2541 }
 0xd10   :  { %v2543_v9 = vsub.f32 %v2539_v45, %v2542_v8 }
 0xd12   :  { %v2544_v15 = vmul.f32 1.442695, %v2543_v9 }
 0xd13   :  { %v2708_v16 = vpop.xlane.xlu0 %2707 }
 0xd14   :  { %4605 = vpow2.f32 %v2544_v15  ;;  %v2709_v17 = vsub.f32 %v2705_v49, %v2708_v16 }
 0xd16   :  { %v2710_v18 = vmul.f32 1.442695, %v2709_v17 }
 0xd17   :  { %v2888_v29 = vpop.xlane.xlu1 %2887 }
 0xd18   :  { %4607 = vpow2.f32 %v2710_v18  ;;  %v2889_v30 = vsub.f32 %v2885_v53, %v2888_v29  ;;  %v4091_v29 = vld [vmem:[%s5461_s5 + $0x20] sm:$0xff] }
 0xd19   :  { %v4602_v22 = vpop.eup %4601 }
 0xd1a   :  { %v4604_v20 = vpop.eup %4603  ;;  %v2214_v23 = vsel %vm305_vm3, %v4602_v22, 0.0  ;;  %v2890_v34 = vmul.f32 1.442695, %v2889_v30 }
 0xd1b   :  { %2215 = vadd.xlane.f32.xlu1 %v2214_v23  ;;  %v2380_v24 = vsel %vm305_vm3, %v4604_v20, 0.0  ;;  %v3054_v31 = vpop.xlane.xlu0 %3053 }
 0xd1c   :  { %2381 = vadd.xlane.f32.xlu0 %v2380_v24  ;;  %v3055_v33 = vsub.f32 %v3051_v19, %v3054_v31  ;;  %4609 = vpow2.f32 %v2890_v34 }
 0xd1e   :  { %v3056_v37 = vmul.f32 1.442695, %v3055_v33 }
 0xd1f   :  { %v3220_v32 = vpop.xlane.xlu1 %3219 }
 0xd20   :  { %v3221_v35 = vsub.f32 %v3217_v60, %v3220_v32  ;;  %4611 = vpow2.f32 %v3056_v37 }
 0xd21   :  { %v4606_v25 = vpop.eup %4605 }
 0xd22   :  { %v2546_v26 = vsel %vm305_vm3, %v4606_v25, 0.0  ;;  %v3222_v38 = vmul.f32 1.442695, %v3221_v35 }
 0xd23   :  { %2547 = vadd.xlane.f32.xlu1 %v2546_v26  ;;  %v3386_v36 = vpop.xlane.xlu0 %3385  ;;  %v2718_v49 = vpop.permute.xlu1 %2717  ;;  %v4094_v26 = vld [vmem:[%s5461_s5 + $0x38] sm:$0xff] }
 0xd24   :  { %v3387_v39 = vsub.f32 %v3383_v0, %v3386_v36  ;;  %4613 = vpow2.f32 %v3222_v38  ;;  %4488 = vmatprep.subr.mxu1 %v4094_v26 }
 0xd25   :  { %v5281_v27 = vpop.eup %4607  ;;  %4489 = vmatpush3.msra.mxu1 %v4094_v26 }
 0xd26   :  { %v2712_v28 = vsel %vm305_vm3, %v5281_v27, 0.0  ;;  %v3388_v40 = vmul.f32 1.442695, %v3387_v39 }
 0xd27   :  { %2713 = vadd.xlane.f32.xlu0 %v2712_v28  ;;  %v2552_v50 = vpop.permute.xlu0 %2551  ;;  %v4092_v28 = vld [vmem:[%s5461_s5 + $0x28] sm:$0xff] }
 0xd28   :  { %4615 = vpow2.f32 %v3388_v40 }
 0xd29   :  { %v4610_v41 = vpop.eup %4609 }
 0xd2a   :  { %v2892_v43 = vsel %vm305_vm3, %v4610_v41, 0.0 }
 0xd2d   :  { %v5289_v42 = vpop.eup %4611 }
 0xd2e   :  { %v3058_v45 = vsel %vm305_vm3, %v5289_v42, 0.0 }
 0xd31   :  { %v5292_v44 = vpop.eup %4613 }
 0xd32   :  { %v3224_v46 = vsel %vm305_vm3, %v5292_v44, 0.0 }
 0xd34   :  { %3063 = vrot.lane.b32.xlu1 %v5202_v21, %s5493_s4 }
 0xd35   :  { %v5298_v47 = vpop.eup %4615 }
 0xd36   :  { %v3390_v48 = vsel %vm305_vm3, %v5298_v47, 0.0 }
 0xd3d   :  { %2897 = vrot.lane.b32.xlu0 %v5202_v21, %s4747_s1 }
 0xd58   :  { %2893 = vadd.xlane.f32.xlu1 %v2892_v43 }
 0xd5c   :  { %3059 = vadd.xlane.f32.xlu0 %v3058_v45  ;;  %3225 = vadd.xlane.f32.xlu1 %v3224_v46 }
 0xd60   :  { %3391 = vadd.xlane.f32.xlu1 %v3390_v48 }
 0xd71   :  { %3395 = vrot.lane.b32.xlu1 %v5202_v21, %s5494_s27 }
 0xd72   :  { %3229 = vrot.lane.b32.xlu0 %v5202_v21, %s5495_s28 }
 0xda4   :  { %v2216_v51 = vpop.xlane.xlu1 %2215 }
 0xda5   :  { %4617 = vrcp.f32 %v2216_v51  ;;  %v2382_v52 = vpop.xlane.xlu0 %2381 }
 0xda6   :  { %4619 = vrcp.f32 %v2382_v52 }
 0xdac   :  { %v2548_v53 = vpop.xlane.xlu1 %2547 }
 0xdad   :  { %4621 = vrcp.f32 %v2548_v53 }
 0xdb0   :  { %v2714_v54 = vpop.xlane.xlu0 %2713  ;;  %v3064_v62 = vpop.permute.xlu1 %3063 }
 0xdb1   :  { %4623 = vrcp.f32 %v2714_v54 }
 0xdb2   :  { %v4618_v55 = vpop.eup %4617 }
 0xdb3   :  { %v2218_v56 = vmul.f32 %v4618_v55, %v4602_v22  ;;  %v4620_v19 = vpop.eup %4619 }
 0xdb4   :  { %v2384_v21 = vmul.f32 %v4620_v19, %v4604_v20  ;;  %v2898_v61 = vpop.permute.xlu0 %2897 }
 0xdb5   :  { %4416 = vmatmul.mubr.msk.f32.vlgmr.msra.gmra.mxu0 %vm305_vm3, %v2218_v56 }
 0xdb6   :  { %4424 = vmatpush3.msra.mxu0 %v5276_v12  ;;  %4425 = vmatprep.mubr.msk.f32.mxu0 %vm4738_vm2, %v4737_v14 }
 0xdb7   :  { %4433 = vmatprep.subr.mxu0 %v4737_v14 }
 0xdb9   :  { %4426 = vmatmul.mubr.msk.f32.vlgmr.msra.gmra.mxu0 %vm305_vm3, %v2384_v21 }
 0xdba   :  { %v4622_v57 = vpop.eup %4621  ;;  %4434 = vmatpush3.msra.mxu0 %v2552_v50  ;;  %4435 = vmatprep.mubr.msk.f32.mxu0 %vm4738_vm2, %v4737_v14  ;;  %v4096_v50 = vld [vmem:[%s5462_s6 + $0x1] ss:$0 sm:$0xff] }
 0xdbb   :  { %4443 = vmatprep.subr.mxu0 %v4737_v14  ;;  %v2550_v58 = vmul.f32 %v4622_v57, %v4606_v25 }
 0xdbd   :  { %4436 = vmatmul.mubr.msk.f32.vlgmr.msra.gmra.mxu0 %vm305_vm3, %v2550_v58 }
 0xdbe   :  { %v4624_v59 = vpop.eup %4623  ;;  %4444 = vmatpush3.msra.mxu0 %v2718_v49  ;;  %4445 = vmatprep.mubr.msk.f32.mxu0 %vm4738_vm2, %v4737_v14 }
 0xdbf   :  { %4453 = vmatprep.subr.mxu0 %v4737_v14  ;;  %v2716_v60 = vmul.f32 %v4624_v59, %v5281_v27  ;;  %v4093_v27 = vld [vmem:[%s5461_s5 + $0x30] sm:$0xff] }
 0xdc0   :  { %4490 = vmatprep.subr.mxu1 %v4093_v27 }
 0xdc1   :  { %4446 = vmatmul.mubr.msk.f32.vlgmr.msra.gmra.mxu0 %vm305_vm3, %v2716_v60  ;;  %4491 = vmatpush3.msra.mxu1 %v4093_v27 }
 0xdc2   :  { %4454 = vmatpush3.msra.mxu0 %v2898_v61  ;;  %4455 = vmatprep.mubr.msk.f32.mxu0 %vm4738_vm2, %v4737_v14 }
 0xdc3   :  { %4463 = vmatprep.subr.mxu0 %v4737_v14  ;;  %4492 = vmatprep.subr.mxu1 %v4092_v28 }
 0xdc4   :  { %4493 = vmatpush3.msra.mxu1 %v4092_v28 }
 0xdc5   :  { %4494 = vmatprep.subr.mxu1 %v4091_v29 }
 0xdc6   :  { %4495 = vmatpush3.msra.mxu1 %v4091_v29 }
 0xde1   :  { %v2894_v63 = vpop.xlane.xlu1 %2893 }
 0xde2   :  { %4625 = vrcp.f32 %v2894_v63 }
 0xde5   :  { %v3060_v0 = vpop.xlane.xlu0 %3059  ;;  %v3226_v1 = vpop.xlane.xlu1 %3225 }
 0xde6   :  { %4627 = vrcp.f32 %v3060_v0 }
 0xde7   :  { %4629 = vrcp.f32 %v3226_v1 }
 0xde9   :  { %v3392_v13 = vpop.xlane.xlu1 %3391  ;;  %v3230_v6 = vpop.permute.xlu0 %3229 }
 0xdea   :  { %4631 = vrcp.f32 %v3392_v13  ;;  %v4105_v13 = vld [vmem:[%s5465_s9 + $0x30] sm:$0xff] }
 0xded   :  { %v3396_v9 = vpop.permute.xlu1 %3395 }
 0xdef   :  { %v4626_v12 = vpop.eup %4625 }
 0xdf0   :  { %v2896_v2 = vmul.f32 %v4626_v12, %v4610_v41  ;;  %v4104_v12 = vld [vmem:[%s5465_s9 + $0x28] sm:$0xff] }
 0xdf2   :  { %4456 = vmatmul.mubr.msk.f32.vlgmr.msra.gmra.mxu0 %vm305_vm3, %v2896_v2  ;;  %v4103_v2 = vld [vmem:[%s5465_s9 + $0x20] sm:$0xff] }
 0xdf3   :  { %v4628_v3 = vpop.eup %4627  ;;  %4464 = vmatpush3.msra.mxu0 %v3064_v62  ;;  %4465 = vmatprep.mubr.msk.f32.mxu0 %vm4738_vm2, %v4737_v14 }
 0xdf4   :  { %4473 = vmatprep.subr.mxu0 %v4737_v14  ;;  %v3062_v4 = vmul.f32 %v4628_v3, %v5289_v42  ;;  %v4630_v5 = vpop.eup %4629  ;;  %v4117_v3 = vld [vmem:[%s5467_s11 + $0x78] sm:$0xff] }
 0xdf5   :  { %v3228_v7 = vmul.f32 %v4630_v5, %v5292_v44  ;;  %4510 = vmatprep.subr.mxu1 %v4117_v3  ;;  %v4115_v5 = vld [vmem:[%s5467_s11 + $0x68] sm:$0xff] }
 0xdf6   :  { %4466 = vmatmul.mubr.msk.f32.vlgmr.msra.gmra.mxu0 %vm305_vm3, %v3062_v4  ;;  %v4116_v4 = vld [vmem:[%s5467_s11 + $0x70] sm:$0xff] }
 0xdf7   :  { %4474 = vmatpush3.msra.mxu0 %v3230_v6  ;;  %4475 = vmatprep.mubr.msk.f32.mxu0 %vm4738_vm2, %v4737_v14  ;;  %v4632_v8 = vpop.eup %4631  ;;  %v4114_v6 = vld [vmem:[%s5467_s11 + $0x60] sm:$0xff] }
 0xdf8   :  { %4483 = vmatprep.subr.mxu0 %v4737_v14  ;;  %v3394_v15 = vmul.f32 %v4632_v8, %v5298_v47 }
 0xdfa   :  { %4476 = vmatmul.mubr.msk.f32.vlgmr.msra.gmra.mxu0 %vm305_vm3, %v3228_v7 }
 0xdfb   :  { %4484 = vmatpush3.msra.mxu0 %v3396_v9  ;;  %4485 = vmatprep.mubr.msk.f32.mxu0 %vm4738_vm2, %v4737_v14 }
 0xdfe   :  { %4486 = vmatmul.mubr.msk.f32.vlgmr.msra.gmra.mxu0 %vm305_vm3, %v3394_v15 }
 0xe75   :  { %v2291_v16 = vpop.f32.mrf.mxu0 }
 0xe77   :  { %v4417_v17 = vpop.f32.mrf.mxu0 }
 0xe79   :  { %v2457_v18 = vpop.f32.mrf.mxu0 }
 0xe7a   :  { %2794 = vrot.lane.b32.xlu0 %v2457_v18, %s4750_s22 }
 0xe7b   :  { %v4427_v22 = vpop.f32.mrf.mxu0 }
 0xe7c   :  { %v4101_v22 = vld [vmem:[%s5463_s7 + $0x1] ss:$0 sm:$0xff] }
 0xe7d   :  { %v2623_v20 = vpop.f32.mrf.mxu0 }
 0xe7e   :  { %2798 = vrot.lane.b32.xlu1 %v2623_v20, %s4733_s23 }
 0xe7f   :  { %v4437_v23 = vpop.f32.mrf.mxu0 }
 0xe80   :  { %v4102_v23 = vld [vmem:[%s5464_s8 + $0x1] ss:$0 sm:$0xff] }
 0xe81   :  { %v2789_v24 = vpop.f32.mrf.mxu0 }
 0xe82   :  { %2802 = vrot.lane.b32.xlu1 %v2789_v24, %s4751_s24 }
 0xe83   :  { %v4447_v25 = vpop.f32.mrf.mxu0 }
 0xeb2   :  { %v2969_v30 = vpop.f32.mrf.mxu0 }
 0xeb4   :  { %v4457_v31 = vpop.f32.mrf.mxu0 }
 0xeb5   :  { %v4112_v31 = vld [vmem:[%s5467_s11 + $0x50] sm:$0xff] }
 0xeb6   :  { %v3135_v32 = vpop.f32.mrf.mxu0 }
 0xeb7   :  { %3472 = vrot.lane.b32.xlu0 %v3135_v32, %s4750_s22  ;;  %v4111_v32 = vld [vmem:[%s5467_s11 + $0x48] sm:$0xff] }
 0xeb8   :  { %v4467_v33 = vpop.f32.mrf.mxu0 }
 0xeb9   :  { %v4110_v33 = vld [vmem:[%s5467_s11 + $0x40] sm:$0xff] }
 0xeba   :  { %v3301_v34 = vpop.f32.mrf.mxu0 }
 0xebb   :  { %3476 = vrot.lane.b32.xlu0 %v3301_v34, %s4733_s23  ;;  %v4107_v34 = vld [vmem:[#allocation3 + $0x1] ss:$0 sm:$0xff] }
 0xebc   :  { %v4477_v35 = vpop.f32.mrf.mxu0 }
 0xebe   :  { %v3467_v36 = vpop.f32.mrf.mxu0 }
 0xebf   :  { %3480 = vrot.lane.b32.xlu1 %v3467_v36, %s4751_s24 }
 0xec0   :  { %v4487_v37 = vpop.f32.mrf.mxu0 }
 0xeec   :  { %v2795_v38 = vpop.permute.xlu0 %2794 }
 0xeed   :  { %v2805_v40 = vsel %vm305_vm3, %v2291_v16, %v2795_v38 }
 0xef0   :  { %v2799_v39 = vpop.permute.xlu1 %2798 }
 0xef1   :  { %v2806_v41 = vsel %vm127_vm0, %v2805_v40, %v2799_v39 }
 0xef4   :  { %v2803_v42 = vpop.permute.xlu1 %2802 }
 0xef5   :  { %v2807_v43 = vsel %vm980_vm4, %v2806_v41, %v2803_v42  ;;  %v4118_v41 = vld [vmem:[#allocation5 + $0x1] ss:$0 sm:$0xff] }
 0xef6   :  { %4496 = vmatprep.mubr.msk.f32.mxu1 %vm220_vm1, %v2807_v43 }
 0xf29   :  { %v3473_v44 = vpop.permute.xlu0 %3472 }
 0xf2a   :  { %v3483_v46 = vsel %vm305_vm3, %v2969_v30, %v3473_v44  ;;  %v4113_v30 = vld [vmem:[%s5467_s11 + $0x58] sm:$0xff] }
 0xf2d   :  { %v3477_v45 = vpop.permute.xlu0 %3476 }
 0xf2e   :  { %v3484_v47 = vsel %vm127_vm0, %v3483_v46, %v3477_v45 }
 0xf31   :  { %v3481_v48 = vpop.permute.xlu1 %3480 }
 0xf32   :  { %v3485_v49 = vsel %vm980_vm4, %v3484_v47, %v3481_v48 }
 0xf33   :  { %4497 = vmatmul.mubr.msk.f32.vlgmr.msra.gmra.mxu1 %vm220_vm1, %v3485_v49 }
 0xf34   :  { %4511 = vmatpush3.msra.mxu1 %v4117_v3 }
 0xf35   :  { %4512 = vmatprep.subr.mxu1 %v4116_v4 }
 0xf36   :  { %4513 = vmatpush3.msra.mxu1 %v4116_v4 }
 0xf37   :  { %4514 = vmatprep.subr.mxu1 %v4115_v5 }
 0xf38   :  { %4515 = vmatpush3.msra.mxu1 %v4115_v5 }
 0xf39   :  { %4516 = vmatprep.subr.mxu1 %v4114_v6 }
 0xf3a   :  { %4517 = vmatpush3.msra.mxu1 %v4114_v6 }
 0xf3b   :  { %4518 = vmatprep.subr.mxu1 %v4113_v30 }
 0xf3c   :  { %4519 = vmatpush3.msra.mxu1 %v4113_v30 }
 0xf3d   :  { %4520 = vmatprep.subr.mxu1 %v4112_v31 }
 0xf3e   :  { %4521 = vmatpush3.msra.mxu1 %v4112_v31 }
 0xf3f   :  { %4522 = vmatprep.subr.mxu1 %v4111_v32 }
 0xf40   :  { %4523 = vmatpush3.msra.mxu1 %v4111_v32 }
 0xf41   :  { %4524 = vmatprep.subr.mxu1 %v4110_v33 }
 0xf42   :  { %4525 = vmatpush3.msra.mxu1 %v4110_v33 }
 0xff3   :  { %v4498_v51 = vpop.f32.mrf.mxu1 }
 0xff4   :  { %v3577_v52 = vadd.f32 %v4498_v51, %v4096_v50 }
 0xff5   :  { %v3571_v53 = vpop.f32.mrf.mxu1 }
 0xff6   :  { %v3572_v54 = vadd.f32 %v4096_v50, %v3571_v53  ;;  %v3581_v55 = vadd.f32 %v3577_v52, %v5177_v11 }
 0xff8   :  { %v3589_v56 = vsel %vm220_vm1, %v3581_v55, 0.0  ;;  %v3580_v19 = vadd.f32 %v3572_v54, %v5175_v10  ;;  %v4106_v10 = vld [vmem:[%s5465_s9 + $0x38] sm:$0xff] }
 0xff9   :  { %3590 = vadd.xlane.f32.xlu1 %v3589_v56  ;;  %4499 = vmatprep.subr.mxu0 %v4106_v10 }
 0xffa   :  { %v3586_v21 = vsel %vm220_vm1, %v3580_v19, 0.0  ;;  %4500 = vmatpush3.msra.mxu0 %v4106_v10 }
 0xffb   :  { %3587 = vadd.xlane.f32.xlu0 %v3586_v21  ;;  %4501 = vmatprep.subr.mxu0 %v4105_v13 }
 0xffc   :  { %4502 = vmatpush3.msra.mxu0 %v4105_v13  ;;  %v4124_v13 = vld [vmem:[%s5470_s14 + $0x1] ss:$0 sm:$0xff] }
 0xffd   :  { %4503 = vmatprep.subr.mxu0 %v4104_v12 }
 0xffe   :  { %4504 = vmatpush3.msra.mxu0 %v4104_v12 }
 0xfff   :  { %4505 = vmatprep.subr.mxu0 %v4103_v2 }
0x1000   :  { %4506 = vmatpush3.msra.mxu0 %v4103_v2 }
0x1001   :  { %4529 = vmatprep.subr.mxu0 %v4737_v14 }
0x1082   :  { %v3591_v57 = vpop.xlane.xlu1 %3590 }
0x1083   :  { %v3593_v58 = vmul.f32 0.03125, %v3591_v57 }
0x1084   :  { %v3588_v59 = vpop.xlane.xlu0 %3587 }
0x1085   :  { %v3592_v60 = vmul.f32 0.03125, %v3588_v59  ;;  %v3595_v61 = vsub.f32 %v3581_v55, %v3593_v58 }
0x1087   :  { %v3594_v62 = vsub.f32 %v3580_v19, %v3592_v60  ;;  %v3597_v1 = vmul.f32 %v3595_v61, %v3595_v61 }
0x1089   :  { %v3596_v63 = vmul.f32 %v3594_v62, %v3594_v62  ;;  %v3601_v11 = vsel %vm220_vm1, %v3597_v1, 0.0  ;;  %v4123_v1 = vld [vmem:[%s5469_s13 + $0x1] ss:$0 sm:$0xff] }
0x108b   :  { %v3598_v0 = vsel %vm220_vm1, %v3596_v63, 0.0 }
0x108c   :  { %3599 = vadd.xlane.f32.xlu0 %v3598_v0 }
0x1090   :  { %3602 = vadd.xlane.f32.xlu0 %v3601_v11 }
0x1115   :  { %v3600_v7 = vpop.xlane.xlu0 %3599 }
0x1116   :  { %v3604_v8 = vmul.f32 0.03125, %v3600_v7 }
0x1118   :  { %v3606_v9 = vadd.f32 1e-05, %v3604_v8 }
0x1119   :  { %v3603_v15 = vpop.xlane.xlu0 %3602 }
0x111a   :  { %4633 = vrsqrt.f32 %v3606_v9  ;;  %v3605_v16 = vmul.f32 0.03125, %v3603_v15 }
0x111c   :  { %v3607_v17 = vadd.f32 1e-05, %v3605_v16 }
0x111e   :  { %4635 = vrsqrt.f32 %v3607_v17 }
0x1127   :  { %v4634_v18 = vpop.eup %4633 }
0x1128   :  { %v3610_v20 = vmul.f32 %v4634_v18, %v3594_v62 }
0x112a   :  { %v3618_v24 = vmul.f32 %v4101_v22, %v3610_v20 }
0x112b   :  { %v4636_v25 = vpop.eup %4635 }
0x112c   :  { %v3611_v26 = vmul.f32 %v4636_v25, %v3595_v61  ;;  %v3626_v27 = vadd.f32 %v4102_v23, %v3618_v24  ;;  %v3925_v25 = vld [vmem:[%s5473_s17 + $0x18] sm:$0xff] }
0x112e   :  { %v3619_v28 = vmul.f32 %v4101_v22, %v3611_v26  ;;  %4507 = vmatprep.mubr.msk.f32.mxu0 %vm220_vm1, %v3626_v27  ;;  %v3924_v26 = vld [vmem:[%s5473_s17 + $0x10] sm:$0xff] }
0x1130   :  { %v3627_v29 = vadd.f32 %v4102_v23, %v3619_v28  ;;  %v3922_v28 = vld [vmem:[%s5473_s17] sm:$0xff] }
0x1132   :  { %4508 = vmatmul.mubr.msk.f32.vlgmr.msra.gmra.mxu0 %vm220_vm1, %v3627_v29 }
0x1133   :  { %4537 = vmatprep.mubr.msk.f32.mxu0 %vm4738_vm2, %v4737_v14  ;;  %4530 = vmatpush3.msra.mxu0 %v3925_v25 }
0x1134   :  { %4531 = vmatprep.subr.mxu0 %v4737_v14 }
0x1135   :  { %4532 = vmatpush3.msra.mxu0 %v3924_v26 }
0x1136   :  { %4533 = vmatprep.subr.mxu0 %v4737_v14 }
0x11f2   :  { %v4509_v35 = vpop.f32.mrf.mxu0 }
0x11f3   :  { %v3719_v36 = vadd.f32 %v4509_v35, %v4107_v34 }
0x11f4   :  { %v3713_v37 = vpop.f32.mrf.mxu0 }
0x11f5   :  { %v3714_v38 = vadd.f32 %v4107_v34, %v3713_v37  ;;  %v3723_v40 = vmax.f32 %v3719_v36, 0.0  ;;  %v4125_v36 = vld [vmem:[#allocation7] ss:$0 sm:$0xff] }
0x11f7   :  { %v3722_v39 = vmax.f32 %v3714_v38, 0.0 }
0x11f9   :  { %4526 = vmatprep.mubr.msk.f32.mxu1 %vm1908_vm5, %v3722_v39  ;;  %v4126_v39 = vld [vmem:[#allocation8] ss:$0 sm:$0xff] }
0x11fa   :  { %4527 = vmatmul.mubr.msk.f32.vlgmr.msra.gmra.mxu1 %vm1908_vm5, %v3723_v40 }
0x12ba   :  { %v4528_v42 = vpop.f32.mrf.mxu1 }
0x12bb   :  { %v3819_v43 = vadd.f32 %v4528_v42, %v4118_v41 }
0x12bc   :  { %v3813_v44 = vpop.f32.mrf.mxu1 }
0x12bd   :  { %v3823_v45 = vadd.f32 %v3819_v43, %v3627_v29  ;;  %v3814_v46 = vadd.f32 %v4118_v41, %v3813_v44 }
0x12bf   :  { %v3822_v47 = vadd.f32 %v3814_v46, %v3626_v27  ;;  %v3831_v48 = vsel %vm220_vm1, %v3823_v45, 0.0  ;;  %v3923_v27 = vld [vmem:[%s5473_s17 + $0x8] sm:$0xff] }
0x12c0   :  { %3832 = vadd.xlane.f32.xlu0 %v3831_v48  ;;  %4534 = vmatpush3.msra.mxu0 %v3923_v27 }
0x12c1   :  { %v3828_v49 = vsel %vm220_vm1, %v3822_v47, 0.0  ;;  %4535 = vmatprep.subr.mxu0 %v4737_v14 }
0x12c2   :  { %3829 = vadd.xlane.f32.xlu1 %v3828_v49  ;;  %4536 = vmatpush3.msra.mxu0 %v3922_v28 }
0x1349   :  { %v3833_v50 = vpop.xlane.xlu0 %3832 }
0x134a   :  { %v3835_v51 = vmul.f32 0.03125, %v3833_v50 }
0x134b   :  { %v3830_v52 = vpop.xlane.xlu1 %3829 }
0x134c   :  { %v3837_v53 = vsub.f32 %v3823_v45, %v3835_v51  ;;  %v3834_v54 = vmul.f32 0.03125, %v3830_v52 }
0x134e   :  { %v3836_v55 = vsub.f32 %v3822_v47, %v3834_v54  ;;  %v3839_v56 = vmul.f32 %v3837_v53, %v3837_v53  ;;  %v4127_v47 = vld [vmem:[#allocation2] ss:$0 sm:$0xff] }
0x1350   :  { %v3843_v19 = vsel %vm220_vm1, %v3839_v56, 0.0  ;;  %v3838_v21 = vmul.f32 %v3836_v55, %v3836_v55 }
0x1351   :  { %3844 = vadd.xlane.f32.xlu0 %v3843_v19 }
0x1352   :  { %v3840_v57 = vsel %vm220_vm1, %v3838_v21, 0.0 }
0x1353   :  { %3841 = vadd.xlane.f32.xlu1 %v3840_v57 }
0x13da   :  { %v3845_v58 = vpop.xlane.xlu0 %3844 }
0x13db   :  { %v3847_v59 = vmul.f32 0.03125, %v3845_v58 }
0x13dc   :  { %v3842_v60 = vpop.xlane.xlu1 %3841 }
0x13dd   :  { %v3849_v61 = vadd.f32 1e-05, %v3847_v59  ;;  %v3846_v62 = vmul.f32 0.03125, %v3842_v60 }
0x13df   :  { %4637 = vrsqrt.f32 %v3849_v61  ;;  %v3848_v63 = vadd.f32 1e-05, %v3846_v62 }
0x13e1   :  { %4639 = vrsqrt.f32 %v3848_v63 }
0x13ec   :  { %v4638_v0 = vpop.eup %4637 }
0x13ed   :  { %v3853_v11 = vmul.f32 %v4638_v0, %v3837_v53 }
0x13ee   :  { %v4640_v10 = vpop.eup %4639 }
0x13ef   :  { %v3861_v12 = vmul.f32 %v4123_v1, %v3853_v11  ;;  %v3852_v2 = vmul.f32 %v4640_v10, %v3836_v55 }
0x13f1   :  { %v3869_v3 = vadd.f32 %v4124_v13, %v3861_v12  ;;  %v3860_v4 = vmul.f32 %v4123_v1, %v3852_v2 }
0x13f3   :  { %v3875_v5 = vsel %vm220_vm1, %v3869_v3, 0.0  ;;  %v3868_v6 = vadd.f32 %v4124_v13, %v3860_v4 }
0x13f4   :  { %3876 = vadd.xlane.f32.xlu0 %v3875_v5 }
0x13f5   :  { %v3872_v7 = vsel %vm220_vm1, %v3868_v6, 0.0 }
0x13f6   :  { %3873 = vadd.xlane.f32.xlu1 %v3872_v7 }
0x147d   :  { %v3877_v8 = vpop.xlane.xlu0 %3876 }
0x147e   :  { %v3879_v9 = vmul.f32 0.03125, %v3877_v8 }
0x147f   :  { %v3874_v15 = vpop.xlane.xlu1 %3873 }
0x1480   :  { %v3881_v16 = vsub.f32 %v3869_v3, %v3879_v9  ;;  %v3878_v17 = vmul.f32 0.03125, %v3874_v15 }
0x1482   :  { %v3880_v18 = vsub.f32 %v3868_v6, %v3878_v17  ;;  %v3883_v22 = vmul.f32 %v3881_v16, %v3881_v16 }
0x1484   :  { %v3887_v20 = vsel %vm220_vm1, %v3883_v22, 0.0  ;;  %v3882_v23 = vmul.f32 %v3880_v18, %v3880_v18 }
0x1485   :  { %3888 = vadd.xlane.f32.xlu0 %v3887_v20 }
0x1486   :  { %v3884_v24 = vsel %vm220_vm1, %v3882_v23, 0.0 }
0x1487   :  { %3885 = vadd.xlane.f32.xlu1 %v3884_v24 }
0x150e   :  { %v3889_v29 = vpop.xlane.xlu0 %3888 }
0x150f   :  { %v3891_v30 = vmul.f32 0.03125, %v3889_v29 }
0x1510   :  { %v3886_v31 = vpop.xlane.xlu1 %3885 }
0x1511   :  { %v3893_v32 = vadd.f32 1e-05, %v3891_v30  ;;  %v3890_v33 = vmul.f32 0.03125, %v3886_v31 }
0x1513   :  { %4641 = vrsqrt.f32 %v3893_v32  ;;  %v3892_v34 = vadd.f32 1e-05, %v3890_v33 }
0x1515   :  { %4643 = vrsqrt.f32 %v3892_v34 }
0x1520   :  { %v4642_v35 = vpop.eup %4641 }
0x1521   :  { %v3897_v37 = vmul.f32 %v4642_v35, %v3881_v16 }
0x1522   :  { %v4644_v38 = vpop.eup %4643 }
0x1523   :  { %v3896_v40 = vmul.f32 %v4644_v38, %v3880_v18  ;;  %v3905_v41 = vmul.f32 %v4125_v36, %v3897_v37 }
0x1525   :  { %v3904_v42 = vmul.f32 %v4125_v36, %v3896_v40  ;;  %v3913_v43 = vadd.f32 %v4126_v39, %v3905_v41 }
0x1527   :  { %v3912_v44 = vadd.f32 %v4126_v39, %v3904_v42  ;;  %v3918_v45 = vrot.slane %v3913_v43, 6 }
0x1529   :  { %v3915_v14 = vrot.slane %v3912_v44, 7 }
0x152b   :  { %v3921_v46 = vsel %vm3920_vm6, %v3915_v14, %v3918_v45 }
0x152c   :  { %4538 = vmatmul.mubr.msk.f32.vlgmr.msra.gmra.mxu0 %vm220_vm1, %v3921_v46 }
0x15ec   :  { %v4002_v48 = vpop.f32.mrf.mxu0 }
0x15ed   :  { %v4003_v49 = vadd.f32 %v4127_v47, %v4002_v48 }
0x15ee   :  { %v4539_v50 = vpop.f32.mrf.mxu0 }
0x15ef   :  { %4007 = vst.msk [vmem:[%s5475_s19] sm:$0x3] %vm4006_vm7, %v4003_v49 }
0x15f0   :  { %4012 = vsyncpa [#allocation4], 1 }
0x15f1   :  { %4013 = vsyncpa [#allocation6], 1 }
0x15f2   :  { %4014 = vsyncpa [#allocation9], 1 }

</bundles_post_ra>
